<compile_context>
chip_gen: v5e
topology: v5e:2x2
jax: 0.10.0
libtpu: 0.0.40
codegen_flags: <defaults>
</compile_context>

<pallas_src>
import jax
import jax.numpy as jnp
import numpy as np
from jax import lax
from jax.experimental import pallas as pl
from jax.experimental.pallas import tpu as pltpu

BN_EPS = 1e-5
_PREC = lax.Precision.HIGHEST


def dis_kernel(conv_w_ref, conv_b_ref, bn_g_ref, bn_b_ref, b2_ref,   # SMEM scalars
               mem_ref, dat_ref, w1_ref, b1_ref, w2_ref,             # VMEM tensors
               out_ref):
    mem = mem_ref[...]                     # (B, L)
    dat = dat_ref[...]                     # (B, L)
    B, L = mem.shape

    # Hoisted shifted slices (slices are not views in Pallas; each one is a
    # lane shift) — computed once, reused by all convRow / convSqu channels.
    mem_l = mem[:, : L - 1]
    mem_r = mem[:, 1:]
    dat_l = dat[:, : L - 1]
    dat_r = dat[:, 1:]

    def bn_fold(maps, gamma, beta):
        # One-pass training-mode BatchNorm2d (biased variance, eps=1e-5):
        # f32 sum / sum-of-squares, then fold scale/shift into a single FMA.
        n = float(sum(int(m.size) for m in maps))
        s = sum(jnp.sum(m) for m in maps)
        ss = sum(jnp.sum(m * m) for m in maps)
        mean = s / n
        var = ss / n - mean * mean
        scale = gamma * lax.rsqrt(var + BN_EPS)
        shift = beta - mean * scale
        return [m * scale + shift for m in maps]

    # Feature-map pieces in exact torch flatten/cat order:
    #   [col c0..c2 | row (c0,h0)(c0,h1)...(c2,h1) | squ c0..c2]
    pieces = []

    # convCol: kernel (2,1) -> 3 maps of (B, L)
    for o in range(3):
        y = conv_w_ref[o, 0] * mem + conv_w_ref[o, 1] * dat + conv_b_ref[0, o]
        pieces += bn_fold([y], bn_g_ref[0, o], bn_b_ref[0, o])

    # convRow: kernel (1,2) -> 3 channels x 2 H-rows of (B, L-1); BN statistics
    # are shared across both H-rows of a channel.
    for o in range(3):
        y0 = conv_w_ref[o, 2] * mem_l + conv_w_ref[o, 3] * mem_r + conv_b_ref[1, o]
        y1 = conv_w_ref[o, 2] * dat_l + conv_w_ref[o, 3] * dat_r + conv_b_ref[1, o]
        pieces += bn_fold([y0, y1], bn_g_ref[1, o], bn_b_ref[1, o])

    # convSqu: kernel (2,2) -> 3 maps of (B, L-1)
    for o in range(3):
        y = (conv_w_ref[o, 4] * mem_l + conv_w_ref[o, 5] * mem_r
             + conv_w_ref[o, 6] * dat_l + conv_w_ref[o, 7] * dat_r
             + conv_b_ref[2, o])
        pieces += bn_fold([y], bn_g_ref[2, o], bn_b_ref[2, o])

    # First dense layer as a split-K accumulation: 12 small MXU dots against
    # the pre-split, zero-padded w1 (12, L, H).  No concat, no unaligned lane
    # merges, single f32 accumulator.
    acc = None
    for i, p in enumerate(pieces):
        k = p.shape[1]                          # L for col pieces, L-1 otherwise
        w_slice = w1_ref[i][:k, :]              # rows >= k are zero padding
        d = jnp.dot(p, w_slice, precision=_PREC,
                    preferred_element_type=jnp.float32)
        acc = d if acc is None else acc + d
    h = jnp.maximum(acc + b1_ref[...], 0.0)     # ReLU; Dropout(p=0.0) == identity

    # Second dense layer (H -> 1) on the VPU/XLU: broadcast-mul + lane reduce
    # instead of paying a second MXU push/drain for 48 MACs.
    out_ref[...] = (jnp.sum(h * w2_ref[...], axis=1, keepdims=True)
                    + b2_ref[0, 0])


def _prepare_params(params, L):
    """Wrapper-side (one-time) weight preprocessing for split-K."""
    H = 3 * L
    w1 = params["w1"]                           # (3*(4L-3), H), already (in, out)
    widths = [L] * 3 + [L - 1] * 9              # torch flatten/cat piece widths
    slices, off = [], 0
    for w in widths:
        s = w1[off:off + w, :]
        if w < L:
            s = jnp.concatenate([s, jnp.zeros((L - w, H), w1.dtype)], axis=0)
        slices.append(s)
        off += w
    w1p = jnp.stack(slices, axis=0)             # (12, L, H), zero-padded rows
    w2row = params["w2"].reshape(1, H)          # (H, 1) -> (1, H)
    return w1p, w2row


def dis_forward(input_mem, input_data, params):
    B, L = input_mem.shape
    F = 3 * (4 * L - 3)
    H = 3 * L
    w1p, w2row = _prepare_params(params, L)

    smem = pl.BlockSpec(memory_space=pltpu.MemorySpace.SMEM)
    vmem = pl.BlockSpec(memory_space=pltpu.MemorySpace.VMEM)

    args = (params["conv_w"], params["conv_b"], params["bn_g"], params["bn_b"],
            params["b2"],
            input_mem, input_data, w1p, params["b1"], w2row)

    cost = pl.CostEstimate(
        flops=int(2 * B * F * H + 2 * B * H + 40 * B * L),
        transcendentals=0,
        bytes_accessed=int(sum(int(np.prod(a.shape)) for a in args) * 4 + B * 4),
    )

    # At these shapes (B=8, L=16) a single grid-less call is right.  If batch
    # ever scales, grid over B with lane-dense (TILE_B >= 128) tiles and
    # dimension_semantics=("parallel",) so v7x's two TensorCores split the
    # batch; size TILE_B against v7x's 64 MiB VMEM, not v5e/v6e's 128 MiB.
    return pl.pallas_call(
        dis_kernel,
        out_shape=jax.ShapeDtypeStruct((B, 1), jnp.float32),
        in_specs=[smem] * 5 + [vmem] * 5,
        out_specs=vmem,
        cost_estimate=cost,
    )(*args)


# ---------------- pure-JAX reference (independent, uses lax.conv) ----------
def dis_reference(input_mem, input_data, params):
    B, L = input_mem.shape
    x = jnp.stack([input_mem, input_data], axis=1)[:, None, :, :]   # NCHW (B,1,2,L)

    def conv(x, w, b):
        y = lax.conv_general_dilated(
            x, w, (1, 1), "VALID",
            dimension_numbers=("NCHW", "OIHW", "NCHW"), precision=_PREC)
        return y + b[None, :, None, None]

    def bn_train(y, gamma, beta):
        mean = y.mean(axis=(0, 2, 3), keepdims=True)
        var = ((y - mean) ** 2).mean(axis=(0, 2, 3), keepdims=True)
        return ((y - mean) / jnp.sqrt(var + BN_EPS)
                * gamma[None, :, None, None] + beta[None, :, None, None])

    cw, cb = params["conv_w"], params["conv_b"]
    w_col = cw[:, 0:2].reshape(3, 1, 2, 1)
    w_row = cw[:, 2:4].reshape(3, 1, 1, 2)
    w_squ = cw[:, 4:8].reshape(3, 1, 2, 2)

    x1 = bn_train(conv(x, w_col, cb[0]), params["bn_g"][0], params["bn_b"][0]).reshape(B, -1)
    x2 = bn_train(conv(x, w_row, cb[1]), params["bn_g"][1], params["bn_b"][1]).reshape(B, -1)
    x3 = bn_train(conv(x, w_squ, cb[2]), params["bn_g"][2], params["bn_b"][2]).reshape(B, -1)
    feat = jnp.concatenate([x1, x2, x3], axis=1)

    h = jnp.maximum(jnp.dot(feat, params["w1"], precision=_PREC) + params["b1"], 0.0)
    return jnp.dot(h, params["w2"], precision=_PREC) + params["b2"]


if __name__ == "__main__":
    B = 8                # batch
    L = 16               # args.num_pnitems (input_mem / input_data have L columns)
    F = 3 * (4 * L - 3)  # 183 = concatenated conv-feature width
    H = 3 * L            # 48  = ydense1 output width
    # args.p = 0.0 -> Dropout is an exact identity (deterministic).

    key = jax.random.PRNGKey(0)
    ks = jax.random.split(key, 10)
    params = {
        # conv taps per out-channel: [col(h0), col(h1), row(w0), row(w1),
        #                             squ(h0,w0), squ(h0,w1), squ(h1,w0), squ(h1,w1)]
        "conv_w": jax.random.normal(ks[0], (3, 8), jnp.float32) * 0.5,
        "conv_b": jax.random.normal(ks[1], (3, 3), jnp.float32) * 0.1,   # [layer, ch]
        "bn_g":   1.0 + 0.1 * jax.random.normal(ks[2], (3, 3), jnp.float32),
        "bn_b":   0.1 * jax.random.normal(ks[3], (3, 3), jnp.float32),
        "w1":     jax.random.normal(ks[4], (F, H), jnp.float32) / jnp.sqrt(F),
        "b1":     0.05 * jax.random.normal(ks[5], (1, H), jnp.float32),
        "w2":     jax.random.normal(ks[6], (H, 1), jnp.float32) / jnp.sqrt(H),
        "b2":     0.05 * jax.random.normal(ks[7], (1, 1), jnp.float32),
    }
    input_mem = jax.random.normal(ks[8], (B, L), jnp.float32)
    input_data = jax.random.normal(ks[9], (B, L), jnp.float32)

    y_pred = dis_forward(input_mem, input_data, params)
    y_pred = jax.block_until_ready(y_pred)

    y_ref = jax.block_until_ready(dis_reference(input_mem, input_data, params))
    np.testing.assert_allclose(np.asarray(y_pred), np.asarray(y_ref),
                               rtol=1e-4, atol=1e-4)
    print("KERNEL_OK")
</pallas_src>

<mosaic_0001>
module attributes {stable_mosaic.version = 11 : i64} {
  func.func @dis_kernel(%arg0: memref<3x8xf32, #tpu.memory_space<smem>>, %arg1: memref<3x3xf32, #tpu.memory_space<smem>>, %arg2: memref<3x3xf32, #tpu.memory_space<smem>>, %arg3: memref<3x3xf32, #tpu.memory_space<smem>>, %arg4: memref<1x1xf32, #tpu.memory_space<smem>>, %arg5: memref<8x16xf32, #tpu.memory_space<vmem>>, %arg6: memref<8x16xf32, #tpu.memory_space<vmem>>, %arg7: memref<12x16x48xf32, #tpu.memory_space<vmem>>, %arg8: memref<1x48xf32, #tpu.memory_space<vmem>>, %arg9: memref<1x48xf32, #tpu.memory_space<vmem>>, %arg10: memref<8x1xf32, #tpu.memory_space<vmem>>) attributes {dimension_semantics = [], scalar_prefetch = 0 : i64, scratch_operands = 0 : i64, tpu.core_type = #tpu.core_type<tc>} {
    %c0 = arith.constant 0 : index
    %c0_0 = arith.constant 0 : index
    %0 = vector.load %arg5[%c0, %c0_0] : memref<8x16xf32, #tpu.memory_space<vmem>>, vector<8x16xf32>
    %c0_1 = arith.constant 0 : index
    %c0_2 = arith.constant 0 : index
    %1 = vector.load %arg6[%c0_1, %c0_2] : memref<8x16xf32, #tpu.memory_space<vmem>>, vector<8x16xf32>
    %2 = vector.extract_strided_slice %0 {offsets = [0, 0], sizes = [8, 15], strides = [1, 1]} : vector<8x16xf32> to vector<8x15xf32>
    %3 = vector.extract_strided_slice %0 {offsets = [0, 1], sizes = [8, 15], strides = [1, 1]} : vector<8x16xf32> to vector<8x15xf32>
    %4 = vector.extract_strided_slice %1 {offsets = [0, 0], sizes = [8, 15], strides = [1, 1]} : vector<8x16xf32> to vector<8x15xf32>
    %5 = vector.extract_strided_slice %1 {offsets = [0, 1], sizes = [8, 15], strides = [1, 1]} : vector<8x16xf32> to vector<8x15xf32>
    %c0_3 = arith.constant 0 : index
    %c0_4 = arith.constant 0 : index
    %6 = memref.load %arg0[%c0_3, %c0_4] : memref<3x8xf32, #tpu.memory_space<smem>>
    %7 = vector.broadcast %6 : f32 to vector<8x16xf32>
    %8 = arith.mulf %7, %0 : vector<8x16xf32>
    %c0_5 = arith.constant 0 : index
    %c1 = arith.constant 1 : index
    %9 = memref.load %arg0[%c0_5, %c1] : memref<3x8xf32, #tpu.memory_space<smem>>
    %10 = vector.broadcast %9 : f32 to vector<8x16xf32>
    %11 = arith.mulf %10, %1 : vector<8x16xf32>
    %12 = arith.addf %8, %11 : vector<8x16xf32>
    %c0_6 = arith.constant 0 : index
    %c0_7 = arith.constant 0 : index
    %13 = memref.load %arg1[%c0_6, %c0_7] : memref<3x3xf32, #tpu.memory_space<smem>>
    %14 = vector.broadcast %13 : f32 to vector<8x16xf32>
    %15 = arith.addf %12, %14 : vector<8x16xf32>
    %c0_8 = arith.constant 0 : index
    %c0_9 = arith.constant 0 : index
    %16 = memref.load %arg2[%c0_8, %c0_9] : memref<3x3xf32, #tpu.memory_space<smem>>
    %c0_10 = arith.constant 0 : index
    %c0_11 = arith.constant 0 : index
    %17 = memref.load %arg3[%c0_10, %c0_11] : memref<3x3xf32, #tpu.memory_space<smem>>
    %18 = vector.shape_cast %15 : vector<8x16xf32> to vector<1x8x16xf32>
    %cst = arith.constant dense<0.000000e+00> : vector<1xf32>
    %19 = vector.multi_reduction <add>, %18, %cst [1, 2] : vector<1x8x16xf32> to vector<1xf32>
    %20 = vector.shape_cast %19 : vector<1xf32> to vector<1x1x1xf32>
    %21 = vector.extract %20[0, 0, 0] : f32 from vector<1x1x1xf32>
    %cst_12 = arith.constant 0.000000e+00 : f32
    %22 = arith.addf %cst_12, %21 : f32
    %23 = arith.mulf %15, %15 : vector<8x16xf32>
    %24 = vector.shape_cast %23 : vector<8x16xf32> to vector<1x8x16xf32>
    %cst_13 = arith.constant dense<0.000000e+00> : vector<1xf32>
    %25 = vector.multi_reduction <add>, %24, %cst_13 [1, 2] : vector<1x8x16xf32> to vector<1xf32>
    %26 = vector.shape_cast %25 : vector<1xf32> to vector<1x1x1xf32>
    %27 = vector.extract %26[0, 0, 0] : f32 from vector<1x1x1xf32>
    %cst_14 = arith.constant 0.000000e+00 : f32
    %28 = arith.addf %cst_14, %27 : f32
    %cst_15 = arith.constant 1.280000e+02 : f32
    %29 = arith.divf %22, %cst_15 : f32
    %cst_16 = arith.constant 1.280000e+02 : f32
    %30 = arith.divf %28, %cst_16 : f32
    %31 = arith.mulf %29, %29 : f32
    %32 = arith.subf %30, %31 : f32
    %cst_17 = arith.constant 9.99999974E-6 : f32
    %33 = arith.addf %32, %cst_17 : f32
    %34 = math.rsqrt %33 : f32
    %35 = arith.mulf %16, %34 : f32
    %36 = arith.mulf %29, %35 : f32
    %37 = arith.subf %17, %36 : f32
    %38 = vector.broadcast %35 : f32 to vector<8x16xf32>
    %39 = arith.mulf %15, %38 : vector<8x16xf32>
    %40 = vector.broadcast %37 : f32 to vector<8x16xf32>
    %41 = arith.addf %39, %40 : vector<8x16xf32>
    %c1_18 = arith.constant 1 : index
    %c0_19 = arith.constant 0 : index
    %42 = memref.load %arg0[%c1_18, %c0_19] : memref<3x8xf32, #tpu.memory_space<smem>>
    %43 = vector.broadcast %42 : f32 to vector<8x16xf32>
    %44 = arith.mulf %43, %0 : vector<8x16xf32>
    %c1_20 = arith.constant 1 : index
    %c1_21 = arith.constant 1 : index
    %45 = memref.load %arg0[%c1_20, %c1_21] : memref<3x8xf32, #tpu.memory_space<smem>>
    %46 = vector.broadcast %45 : f32 to vector<8x16xf32>
    %47 = arith.mulf %46, %1 : vector<8x16xf32>
    %48 = arith.addf %44, %47 : vector<8x16xf32>
    %c0_22 = arith.constant 0 : index
    %c1_23 = arith.constant 1 : index
    %49 = memref.load %arg1[%c0_22, %c1_23] : memref<3x3xf32, #tpu.memory_space<smem>>
    %50 = vector.broadcast %49 : f32 to vector<8x16xf32>
    %51 = arith.addf %48, %50 : vector<8x16xf32>
    %c0_24 = arith.constant 0 : index
    %c1_25 = arith.constant 1 : index
    %52 = memref.load %arg2[%c0_24, %c1_25] : memref<3x3xf32, #tpu.memory_space<smem>>
    %c0_26 = arith.constant 0 : index
    %c1_27 = arith.constant 1 : index
    %53 = memref.load %arg3[%c0_26, %c1_27] : memref<3x3xf32, #tpu.memory_space<smem>>
    %54 = vector.shape_cast %51 : vector<8x16xf32> to vector<1x8x16xf32>
    %cst_28 = arith.constant dense<0.000000e+00> : vector<1xf32>
    %55 = vector.multi_reduction <add>, %54, %cst_28 [1, 2] : vector<1x8x16xf32> to vector<1xf32>
    %56 = vector.shape_cast %55 : vector<1xf32> to vector<1x1x1xf32>
    %57 = vector.extract %56[0, 0, 0] : f32 from vector<1x1x1xf32>
    %cst_29 = arith.constant 0.000000e+00 : f32
    %58 = arith.addf %cst_29, %57 : f32
    %59 = arith.mulf %51, %51 : vector<8x16xf32>
    %60 = vector.shape_cast %59 : vector<8x16xf32> to vector<1x8x16xf32>
    %cst_30 = arith.constant dense<0.000000e+00> : vector<1xf32>
    %61 = vector.multi_reduction <add>, %60, %cst_30 [1, 2] : vector<1x8x16xf32> to vector<1xf32>
    %62 = vector.shape_cast %61 : vector<1xf32> to vector<1x1x1xf32>
    %63 = vector.extract %62[0, 0, 0] : f32 from vector<1x1x1xf32>
    %cst_31 = arith.constant 0.000000e+00 : f32
    %64 = arith.addf %cst_31, %63 : f32
    %cst_32 = arith.constant 1.280000e+02 : f32
    %65 = arith.divf %58, %cst_32 : f32
    %cst_33 = arith.constant 1.280000e+02 : f32
    %66 = arith.divf %64, %cst_33 : f32
    %67 = arith.mulf %65, %65 : f32
    %68 = arith.subf %66, %67 : f32
    %cst_34 = arith.constant 9.99999974E-6 : f32
    %69 = arith.addf %68, %cst_34 : f32
    %70 = math.rsqrt %69 : f32
    %71 = arith.mulf %52, %70 : f32
    %72 = arith.mulf %65, %71 : f32
    %73 = arith.subf %53, %72 : f32
    %74 = vector.broadcast %71 : f32 to vector<8x16xf32>
    %75 = arith.mulf %51, %74 : vector<8x16xf32>
    %76 = vector.broadcast %73 : f32 to vector<8x16xf32>
    %77 = arith.addf %75, %76 : vector<8x16xf32>
    %c2 = arith.constant 2 : index
    %c0_35 = arith.constant 0 : index
    %78 = memref.load %arg0[%c2, %c0_35] : memref<3x8xf32, #tpu.memory_space<smem>>
    %79 = vector.broadcast %78 : f32 to vector<8x16xf32>
    %80 = arith.mulf %79, %0 : vector<8x16xf32>
    %c2_36 = arith.constant 2 : index
    %c1_37 = arith.constant 1 : index
    %81 = memref.load %arg0[%c2_36, %c1_37] : memref<3x8xf32, #tpu.memory_space<smem>>
    %82 = vector.broadcast %81 : f32 to vector<8x16xf32>
    %83 = arith.mulf %82, %1 : vector<8x16xf32>
    %84 = arith.addf %80, %83 : vector<8x16xf32>
    %c0_38 = arith.constant 0 : index
    %c2_39 = arith.constant 2 : index
    %85 = memref.load %arg1[%c0_38, %c2_39] : memref<3x3xf32, #tpu.memory_space<smem>>
    %86 = vector.broadcast %85 : f32 to vector<8x16xf32>
    %87 = arith.addf %84, %86 : vector<8x16xf32>
    %c0_40 = arith.constant 0 : index
    %c2_41 = arith.constant 2 : index
    %88 = memref.load %arg2[%c0_40, %c2_41] : memref<3x3xf32, #tpu.memory_space<smem>>
    %c0_42 = arith.constant 0 : index
    %c2_43 = arith.constant 2 : index
    %89 = memref.load %arg3[%c0_42, %c2_43] : memref<3x3xf32, #tpu.memory_space<smem>>
    %90 = vector.shape_cast %87 : vector<8x16xf32> to vector<1x8x16xf32>
    %cst_44 = arith.constant dense<0.000000e+00> : vector<1xf32>
    %91 = vector.multi_reduction <add>, %90, %cst_44 [1, 2] : vector<1x8x16xf32> to vector<1xf32>
    %92 = vector.shape_cast %91 : vector<1xf32> to vector<1x1x1xf32>
    %93 = vector.extract %92[0, 0, 0] : f32 from vector<1x1x1xf32>
    %cst_45 = arith.constant 0.000000e+00 : f32
    %94 = arith.addf %cst_45, %93 : f32
    %95 = arith.mulf %87, %87 : vector<8x16xf32>
    %96 = vector.shape_cast %95 : vector<8x16xf32> to vector<1x8x16xf32>
    %cst_46 = arith.constant dense<0.000000e+00> : vector<1xf32>
    %97 = vector.multi_reduction <add>, %96, %cst_46 [1, 2] : vector<1x8x16xf32> to vector<1xf32>
    %98 = vector.shape_cast %97 : vector<1xf32> to vector<1x1x1xf32>
    %99 = vector.extract %98[0, 0, 0] : f32 from vector<1x1x1xf32>
    %cst_47 = arith.constant 0.000000e+00 : f32
    %100 = arith.addf %cst_47, %99 : f32
    %cst_48 = arith.constant 1.280000e+02 : f32
    %101 = arith.divf %94, %cst_48 : f32
    %cst_49 = arith.constant 1.280000e+02 : f32
    %102 = arith.divf %100, %cst_49 : f32
    %103 = arith.mulf %101, %101 : f32
    %104 = arith.subf %102, %103 : f32
    %cst_50 = arith.constant 9.99999974E-6 : f32
    %105 = arith.addf %104, %cst_50 : f32
    %106 = math.rsqrt %105 : f32
    %107 = arith.mulf %88, %106 : f32
    %108 = arith.mulf %101, %107 : f32
    %109 = arith.subf %89, %108 : f32
    %110 = vector.broadcast %107 : f32 to vector<8x16xf32>
    %111 = arith.mulf %87, %110 : vector<8x16xf32>
    %112 = vector.broadcast %109 : f32 to vector<8x16xf32>
    %113 = arith.addf %111, %112 : vector<8x16xf32>
    %c0_51 = arith.constant 0 : index
    %c2_52 = arith.constant 2 : index
    %114 = memref.load %arg0[%c0_51, %c2_52] : memref<3x8xf32, #tpu.memory_space<smem>>
    %115 = vector.broadcast %114 : f32 to vector<8x15xf32>
    %116 = arith.mulf %115, %2 : vector<8x15xf32>
    %c0_53 = arith.constant 0 : index
    %c3 = arith.constant 3 : index
    %117 = memref.load %arg0[%c0_53, %c3] : memref<3x8xf32, #tpu.memory_space<smem>>
    %118 = vector.broadcast %117 : f32 to vector<8x15xf32>
    %119 = arith.mulf %118, %3 : vector<8x15xf32>
    %120 = arith.addf %116, %119 : vector<8x15xf32>
    %c1_54 = arith.constant 1 : index
    %c0_55 = arith.constant 0 : index
    %121 = memref.load %arg1[%c1_54, %c0_55] : memref<3x3xf32, #tpu.memory_space<smem>>
    %122 = vector.broadcast %121 : f32 to vector<8x15xf32>
    %123 = arith.addf %120, %122 : vector<8x15xf32>
    %c0_56 = arith.constant 0 : index
    %c2_57 = arith.constant 2 : index
    %124 = memref.load %arg0[%c0_56, %c2_57] : memref<3x8xf32, #tpu.memory_space<smem>>
    %125 = vector.broadcast %124 : f32 to vector<8x15xf32>
    %126 = arith.mulf %125, %4 : vector<8x15xf32>
    %c0_58 = arith.constant 0 : index
    %c3_59 = arith.constant 3 : index
    %127 = memref.load %arg0[%c0_58, %c3_59] : memref<3x8xf32, #tpu.memory_space<smem>>
    %128 = vector.broadcast %127 : f32 to vector<8x15xf32>
    %129 = arith.mulf %128, %5 : vector<8x15xf32>
    %130 = arith.addf %126, %129 : vector<8x15xf32>
    %c1_60 = arith.constant 1 : index
    %c0_61 = arith.constant 0 : index
    %131 = memref.load %arg1[%c1_60, %c0_61] : memref<3x3xf32, #tpu.memory_space<smem>>
    %132 = vector.broadcast %131 : f32 to vector<8x15xf32>
    %133 = arith.addf %130, %132 : vector<8x15xf32>
    %c1_62 = arith.constant 1 : index
    %c0_63 = arith.constant 0 : index
    %134 = memref.load %arg2[%c1_62, %c0_63] : memref<3x3xf32, #tpu.memory_space<smem>>
    %c1_64 = arith.constant 1 : index
    %c0_65 = arith.constant 0 : index
    %135 = memref.load %arg3[%c1_64, %c0_65] : memref<3x3xf32, #tpu.memory_space<smem>>
    %136 = vector.shape_cast %123 : vector<8x15xf32> to vector<1x8x15xf32>
    %cst_66 = arith.constant dense<0.000000e+00> : vector<1xf32>
    %137 = vector.multi_reduction <add>, %136, %cst_66 [1, 2] : vector<1x8x15xf32> to vector<1xf32>
    %138 = vector.shape_cast %137 : vector<1xf32> to vector<1x1x1xf32>
    %139 = vector.extract %138[0, 0, 0] : f32 from vector<1x1x1xf32>
    %cst_67 = arith.constant 0.000000e+00 : f32
    %140 = arith.addf %cst_67, %139 : f32
    %141 = vector.shape_cast %133 : vector<8x15xf32> to vector<1x8x15xf32>
    %cst_68 = arith.constant dense<0.000000e+00> : vector<1xf32>
    %142 = vector.multi_reduction <add>, %141, %cst_68 [1, 2] : vector<1x8x15xf32> to vector<1xf32>
    %143 = vector.shape_cast %142 : vector<1xf32> to vector<1x1x1xf32>
    %144 = vector.extract %143[0, 0, 0] : f32 from vector<1x1x1xf32>
    %145 = arith.addf %140, %144 : f32
    %146 = arith.mulf %123, %123 : vector<8x15xf32>
    %147 = vector.shape_cast %146 : vector<8x15xf32> to vector<1x8x15xf32>
    %cst_69 = arith.constant dense<0.000000e+00> : vector<1xf32>
    %148 = vector.multi_reduction <add>, %147, %cst_69 [1, 2] : vector<1x8x15xf32> to vector<1xf32>
    %149 = vector.shape_cast %148 : vector<1xf32> to vector<1x1x1xf32>
    %150 = vector.extract %149[0, 0, 0] : f32 from vector<1x1x1xf32>
    %cst_70 = arith.constant 0.000000e+00 : f32
    %151 = arith.addf %cst_70, %150 : f32
    %152 = arith.mulf %133, %133 : vector<8x15xf32>
    %153 = vector.shape_cast %152 : vector<8x15xf32> to vector<1x8x15xf32>
    %cst_71 = arith.constant dense<0.000000e+00> : vector<1xf32>
    %154 = vector.multi_reduction <add>, %153, %cst_71 [1, 2] : vector<1x8x15xf32> to vector<1xf32>
    %155 = vector.shape_cast %154 : vector<1xf32> to vector<1x1x1xf32>
    %156 = vector.extract %155[0, 0, 0] : f32 from vector<1x1x1xf32>
    %157 = arith.addf %151, %156 : f32
    %cst_72 = arith.constant 2.400000e+02 : f32
    %158 = arith.divf %145, %cst_72 : f32
    %cst_73 = arith.constant 2.400000e+02 : f32
    %159 = arith.divf %157, %cst_73 : f32
    %160 = arith.mulf %158, %158 : f32
    %161 = arith.subf %159, %160 : f32
    %cst_74 = arith.constant 9.99999974E-6 : f32
    %162 = arith.addf %161, %cst_74 : f32
    %163 = math.rsqrt %162 : f32
    %164 = arith.mulf %134, %163 : f32
    %165 = arith.mulf %158, %164 : f32
    %166 = arith.subf %135, %165 : f32
    %167 = vector.broadcast %164 : f32 to vector<8x15xf32>
    %168 = arith.mulf %123, %167 : vector<8x15xf32>
    %169 = vector.broadcast %166 : f32 to vector<8x15xf32>
    %170 = arith.addf %168, %169 : vector<8x15xf32>
    %171 = vector.broadcast %164 : f32 to vector<8x15xf32>
    %172 = arith.mulf %133, %171 : vector<8x15xf32>
    %173 = vector.broadcast %166 : f32 to vector<8x15xf32>
    %174 = arith.addf %172, %173 : vector<8x15xf32>
    %c1_75 = arith.constant 1 : index
    %c2_76 = arith.constant 2 : index
    %175 = memref.load %arg0[%c1_75, %c2_76] : memref<3x8xf32, #tpu.memory_space<smem>>
    %176 = vector.broadcast %175 : f32 to vector<8x15xf32>
    %177 = arith.mulf %176, %2 : vector<8x15xf32>
    %c1_77 = arith.constant 1 : index
    %c3_78 = arith.constant 3 : index
    %178 = memref.load %arg0[%c1_77, %c3_78] : memref<3x8xf32, #tpu.memory_space<smem>>
    %179 = vector.broadcast %178 : f32 to vector<8x15xf32>
    %180 = arith.mulf %179, %3 : vector<8x15xf32>
    %181 = arith.addf %177, %180 : vector<8x15xf32>
    %c1_79 = arith.constant 1 : index
    %c1_80 = arith.constant 1 : index
    %182 = memref.load %arg1[%c1_79, %c1_80] : memref<3x3xf32, #tpu.memory_space<smem>>
    %183 = vector.broadcast %182 : f32 to vector<8x15xf32>
    %184 = arith.addf %181, %183 : vector<8x15xf32>
    %c1_81 = arith.constant 1 : index
    %c2_82 = arith.constant 2 : index
    %185 = memref.load %arg0[%c1_81, %c2_82] : memref<3x8xf32, #tpu.memory_space<smem>>
    %186 = vector.broadcast %185 : f32 to vector<8x15xf32>
    %187 = arith.mulf %186, %4 : vector<8x15xf32>
    %c1_83 = arith.constant 1 : index
    %c3_84 = arith.constant 3 : index
    %188 = memref.load %arg0[%c1_83, %c3_84] : memref<3x8xf32, #tpu.memory_space<smem>>
    %189 = vector.broadcast %188 : f32 to vector<8x15xf32>
    %190 = arith.mulf %189, %5 : vector<8x15xf32>
    %191 = arith.addf %187, %190 : vector<8x15xf32>
    %c1_85 = arith.constant 1 : index
    %c1_86 = arith.constant 1 : index
    %192 = memref.load %arg1[%c1_85, %c1_86] : memref<3x3xf32, #tpu.memory_space<smem>>
    %193 = vector.broadcast %192 : f32 to vector<8x15xf32>
    %194 = arith.addf %191, %193 : vector<8x15xf32>
    %c1_87 = arith.constant 1 : index
    %c1_88 = arith.constant 1 : index
    %195 = memref.load %arg2[%c1_87, %c1_88] : memref<3x3xf32, #tpu.memory_space<smem>>
    %c1_89 = arith.constant 1 : index
    %c1_90 = arith.constant 1 : index
    %196 = memref.load %arg3[%c1_89, %c1_90] : memref<3x3xf32, #tpu.memory_space<smem>>
    %197 = vector.shape_cast %184 : vector<8x15xf32> to vector<1x8x15xf32>
    %cst_91 = arith.constant dense<0.000000e+00> : vector<1xf32>
    %198 = vector.multi_reduction <add>, %197, %cst_91 [1, 2] : vector<1x8x15xf32> to vector<1xf32>
    %199 = vector.shape_cast %198 : vector<1xf32> to vector<1x1x1xf32>
    %200 = vector.extract %199[0, 0, 0] : f32 from vector<1x1x1xf32>
    %cst_92 = arith.constant 0.000000e+00 : f32
    %201 = arith.addf %cst_92, %200 : f32
    %202 = vector.shape_cast %194 : vector<8x15xf32> to vector<1x8x15xf32>
    %cst_93 = arith.constant dense<0.000000e+00> : vector<1xf32>
    %203 = vector.multi_reduction <add>, %202, %cst_93 [1, 2] : vector<1x8x15xf32> to vector<1xf32>
    %204 = vector.shape_cast %203 : vector<1xf32> to vector<1x1x1xf32>
    %205 = vector.extract %204[0, 0, 0] : f32 from vector<1x1x1xf32>
    %206 = arith.addf %201, %205 : f32
    %207 = arith.mulf %184, %184 : vector<8x15xf32>
    %208 = vector.shape_cast %207 : vector<8x15xf32> to vector<1x8x15xf32>
    %cst_94 = arith.constant dense<0.000000e+00> : vector<1xf32>
    %209 = vector.multi_reduction <add>, %208, %cst_94 [1, 2] : vector<1x8x15xf32> to vector<1xf32>
    %210 = vector.shape_cast %209 : vector<1xf32> to vector<1x1x1xf32>
    %211 = vector.extract %210[0, 0, 0] : f32 from vector<1x1x1xf32>
    %cst_95 = arith.constant 0.000000e+00 : f32
    %212 = arith.addf %cst_95, %211 : f32
    %213 = arith.mulf %194, %194 : vector<8x15xf32>
    %214 = vector.shape_cast %213 : vector<8x15xf32> to vector<1x8x15xf32>
    %cst_96 = arith.constant dense<0.000000e+00> : vector<1xf32>
    %215 = vector.multi_reduction <add>, %214, %cst_96 [1, 2] : vector<1x8x15xf32> to vector<1xf32>
    %216 = vector.shape_cast %215 : vector<1xf32> to vector<1x1x1xf32>
    %217 = vector.extract %216[0, 0, 0] : f32 from vector<1x1x1xf32>
    %218 = arith.addf %212, %217 : f32
    %cst_97 = arith.constant 2.400000e+02 : f32
    %219 = arith.divf %206, %cst_97 : f32
    %cst_98 = arith.constant 2.400000e+02 : f32
    %220 = arith.divf %218, %cst_98 : f32
    %221 = arith.mulf %219, %219 : f32
    %222 = arith.subf %220, %221 : f32
    %cst_99 = arith.constant 9.99999974E-6 : f32
    %223 = arith.addf %222, %cst_99 : f32
    %224 = math.rsqrt %223 : f32
    %225 = arith.mulf %195, %224 : f32
    %226 = arith.mulf %219, %225 : f32
    %227 = arith.subf %196, %226 : f32
    %228 = vector.broadcast %225 : f32 to vector<8x15xf32>
    %229 = arith.mulf %184, %228 : vector<8x15xf32>
    %230 = vector.broadcast %227 : f32 to vector<8x15xf32>
    %231 = arith.addf %229, %230 : vector<8x15xf32>
    %232 = vector.broadcast %225 : f32 to vector<8x15xf32>
    %233 = arith.mulf %194, %232 : vector<8x15xf32>
    %234 = vector.broadcast %227 : f32 to vector<8x15xf32>
    %235 = arith.addf %233, %234 : vector<8x15xf32>
    %c2_100 = arith.constant 2 : index
    %c2_101 = arith.constant 2 : index
    %236 = memref.load %arg0[%c2_100, %c2_101] : memref<3x8xf32, #tpu.memory_space<smem>>
    %237 = vector.broadcast %236 : f32 to vector<8x15xf32>
    %238 = arith.mulf %237, %2 : vector<8x15xf32>
    %c2_102 = arith.constant 2 : index
    %c3_103 = arith.constant 3 : index
    %239 = memref.load %arg0[%c2_102, %c3_103] : memref<3x8xf32, #tpu.memory_space<smem>>
    %240 = vector.broadcast %239 : f32 to vector<8x15xf32>
    %241 = arith.mulf %240, %3 : vector<8x15xf32>
    %242 = arith.addf %238, %241 : vector<8x15xf32>
    %c1_104 = arith.constant 1 : index
    %c2_105 = arith.constant 2 : index
    %243 = memref.load %arg1[%c1_104, %c2_105] : memref<3x3xf32, #tpu.memory_space<smem>>
    %244 = vector.broadcast %243 : f32 to vector<8x15xf32>
    %245 = arith.addf %242, %244 : vector<8x15xf32>
    %c2_106 = arith.constant 2 : index
    %c2_107 = arith.constant 2 : index
    %246 = memref.load %arg0[%c2_106, %c2_107] : memref<3x8xf32, #tpu.memory_space<smem>>
    %247 = vector.broadcast %246 : f32 to vector<8x15xf32>
    %248 = arith.mulf %247, %4 : vector<8x15xf32>
    %c2_108 = arith.constant 2 : index
    %c3_109 = arith.constant 3 : index
    %249 = memref.load %arg0[%c2_108, %c3_109] : memref<3x8xf32, #tpu.memory_space<smem>>
    %250 = vector.broadcast %249 : f32 to vector<8x15xf32>
    %251 = arith.mulf %250, %5 : vector<8x15xf32>
    %252 = arith.addf %248, %251 : vector<8x15xf32>
    %c1_110 = arith.constant 1 : index
    %c2_111 = arith.constant 2 : index
    %253 = memref.load %arg1[%c1_110, %c2_111] : memref<3x3xf32, #tpu.memory_space<smem>>
    %254 = vector.broadcast %253 : f32 to vector<8x15xf32>
    %255 = arith.addf %252, %254 : vector<8x15xf32>
    %c1_112 = arith.constant 1 : index
    %c2_113 = arith.constant 2 : index
    %256 = memref.load %arg2[%c1_112, %c2_113] : memref<3x3xf32, #tpu.memory_space<smem>>
    %c1_114 = arith.constant 1 : index
    %c2_115 = arith.constant 2 : index
    %257 = memref.load %arg3[%c1_114, %c2_115] : memref<3x3xf32, #tpu.memory_space<smem>>
    %258 = vector.shape_cast %245 : vector<8x15xf32> to vector<1x8x15xf32>
    %cst_116 = arith.constant dense<0.000000e+00> : vector<1xf32>
    %259 = vector.multi_reduction <add>, %258, %cst_116 [1, 2] : vector<1x8x15xf32> to vector<1xf32>
    %260 = vector.shape_cast %259 : vector<1xf32> to vector<1x1x1xf32>
    %261 = vector.extract %260[0, 0, 0] : f32 from vector<1x1x1xf32>
    %cst_117 = arith.constant 0.000000e+00 : f32
    %262 = arith.addf %cst_117, %261 : f32
    %263 = vector.shape_cast %255 : vector<8x15xf32> to vector<1x8x15xf32>
    %cst_118 = arith.constant dense<0.000000e+00> : vector<1xf32>
    %264 = vector.multi_reduction <add>, %263, %cst_118 [1, 2] : vector<1x8x15xf32> to vector<1xf32>
    %265 = vector.shape_cast %264 : vector<1xf32> to vector<1x1x1xf32>
    %266 = vector.extract %265[0, 0, 0] : f32 from vector<1x1x1xf32>
    %267 = arith.addf %262, %266 : f32
    %268 = arith.mulf %245, %245 : vector<8x15xf32>
    %269 = vector.shape_cast %268 : vector<8x15xf32> to vector<1x8x15xf32>
    %cst_119 = arith.constant dense<0.000000e+00> : vector<1xf32>
    %270 = vector.multi_reduction <add>, %269, %cst_119 [1, 2] : vector<1x8x15xf32> to vector<1xf32>
    %271 = vector.shape_cast %270 : vector<1xf32> to vector<1x1x1xf32>
    %272 = vector.extract %271[0, 0, 0] : f32 from vector<1x1x1xf32>
    %cst_120 = arith.constant 0.000000e+00 : f32
    %273 = arith.addf %cst_120, %272 : f32
    %274 = arith.mulf %255, %255 : vector<8x15xf32>
    %275 = vector.shape_cast %274 : vector<8x15xf32> to vector<1x8x15xf32>
    %cst_121 = arith.constant dense<0.000000e+00> : vector<1xf32>
    %276 = vector.multi_reduction <add>, %275, %cst_121 [1, 2] : vector<1x8x15xf32> to vector<1xf32>
    %277 = vector.shape_cast %276 : vector<1xf32> to vector<1x1x1xf32>
    %278 = vector.extract %277[0, 0, 0] : f32 from vector<1x1x1xf32>
    %279 = arith.addf %273, %278 : f32
    %cst_122 = arith.constant 2.400000e+02 : f32
    %280 = arith.divf %267, %cst_122 : f32
    %cst_123 = arith.constant 2.400000e+02 : f32
    %281 = arith.divf %279, %cst_123 : f32
    %282 = arith.mulf %280, %280 : f32
    %283 = arith.subf %281, %282 : f32
    %cst_124 = arith.constant 9.99999974E-6 : f32
    %284 = arith.addf %283, %cst_124 : f32
    %285 = math.rsqrt %284 : f32
    %286 = arith.mulf %256, %285 : f32
    %287 = arith.mulf %280, %286 : f32
    %288 = arith.subf %257, %287 : f32
    %289 = vector.broadcast %286 : f32 to vector<8x15xf32>
    %290 = arith.mulf %245, %289 : vector<8x15xf32>
    %291 = vector.broadcast %288 : f32 to vector<8x15xf32>
    %292 = arith.addf %290, %291 : vector<8x15xf32>
    %293 = vector.broadcast %286 : f32 to vector<8x15xf32>
    %294 = arith.mulf %255, %293 : vector<8x15xf32>
    %295 = vector.broadcast %288 : f32 to vector<8x15xf32>
    %296 = arith.addf %294, %295 : vector<8x15xf32>
    %c0_125 = arith.constant 0 : index
    %c4 = arith.constant 4 : index
    %297 = memref.load %arg0[%c0_125, %c4] : memref<3x8xf32, #tpu.memory_space<smem>>
    %298 = vector.broadcast %297 : f32 to vector<8x15xf32>
    %299 = arith.mulf %298, %2 : vector<8x15xf32>
    %c0_126 = arith.constant 0 : index
    %c5 = arith.constant 5 : index
    %300 = memref.load %arg0[%c0_126, %c5] : memref<3x8xf32, #tpu.memory_space<smem>>
    %301 = vector.broadcast %300 : f32 to vector<8x15xf32>
    %302 = arith.mulf %301, %3 : vector<8x15xf32>
    %303 = arith.addf %299, %302 : vector<8x15xf32>
    %c0_127 = arith.constant 0 : index
    %c6 = arith.constant 6 : index
    %304 = memref.load %arg0[%c0_127, %c6] : memref<3x8xf32, #tpu.memory_space<smem>>
    %305 = vector.broadcast %304 : f32 to vector<8x15xf32>
    %306 = arith.mulf %305, %4 : vector<8x15xf32>
    %307 = arith.addf %303, %306 : vector<8x15xf32>
    %c0_128 = arith.constant 0 : index
    %c7 = arith.constant 7 : index
    %308 = memref.load %arg0[%c0_128, %c7] : memref<3x8xf32, #tpu.memory_space<smem>>
    %309 = vector.broadcast %308 : f32 to vector<8x15xf32>
    %310 = arith.mulf %309, %5 : vector<8x15xf32>
    %311 = arith.addf %307, %310 : vector<8x15xf32>
    %c2_129 = arith.constant 2 : index
    %c0_130 = arith.constant 0 : index
    %312 = memref.load %arg1[%c2_129, %c0_130] : memref<3x3xf32, #tpu.memory_space<smem>>
    %313 = vector.broadcast %312 : f32 to vector<8x15xf32>
    %314 = arith.addf %311, %313 : vector<8x15xf32>
    %c2_131 = arith.constant 2 : index
    %c0_132 = arith.constant 0 : index
    %315 = memref.load %arg2[%c2_131, %c0_132] : memref<3x3xf32, #tpu.memory_space<smem>>
    %c2_133 = arith.constant 2 : index
    %c0_134 = arith.constant 0 : index
    %316 = memref.load %arg3[%c2_133, %c0_134] : memref<3x3xf32, #tpu.memory_space<smem>>
    %317 = vector.shape_cast %314 : vector<8x15xf32> to vector<1x8x15xf32>
    %cst_135 = arith.constant dense<0.000000e+00> : vector<1xf32>
    %318 = vector.multi_reduction <add>, %317, %cst_135 [1, 2] : vector<1x8x15xf32> to vector<1xf32>
    %319 = vector.shape_cast %318 : vector<1xf32> to vector<1x1x1xf32>
    %320 = vector.extract %319[0, 0, 0] : f32 from vector<1x1x1xf32>
    %cst_136 = arith.constant 0.000000e+00 : f32
    %321 = arith.addf %cst_136, %320 : f32
    %322 = arith.mulf %314, %314 : vector<8x15xf32>
    %323 = vector.shape_cast %322 : vector<8x15xf32> to vector<1x8x15xf32>
    %cst_137 = arith.constant dense<0.000000e+00> : vector<1xf32>
    %324 = vector.multi_reduction <add>, %323, %cst_137 [1, 2] : vector<1x8x15xf32> to vector<1xf32>
    %325 = vector.shape_cast %324 : vector<1xf32> to vector<1x1x1xf32>
    %326 = vector.extract %325[0, 0, 0] : f32 from vector<1x1x1xf32>
    %cst_138 = arith.constant 0.000000e+00 : f32
    %327 = arith.addf %cst_138, %326 : f32
    %cst_139 = arith.constant 1.200000e+02 : f32
    %328 = arith.divf %321, %cst_139 : f32
    %cst_140 = arith.constant 1.200000e+02 : f32
    %329 = arith.divf %327, %cst_140 : f32
    %330 = arith.mulf %328, %328 : f32
    %331 = arith.subf %329, %330 : f32
    %cst_141 = arith.constant 9.99999974E-6 : f32
    %332 = arith.addf %331, %cst_141 : f32
    %333 = math.rsqrt %332 : f32
    %334 = arith.mulf %315, %333 : f32
    %335 = arith.mulf %328, %334 : f32
    %336 = arith.subf %316, %335 : f32
    %337 = vector.broadcast %334 : f32 to vector<8x15xf32>
    %338 = arith.mulf %314, %337 : vector<8x15xf32>
    %339 = vector.broadcast %336 : f32 to vector<8x15xf32>
    %340 = arith.addf %338, %339 : vector<8x15xf32>
    %c1_142 = arith.constant 1 : index
    %c4_143 = arith.constant 4 : index
    %341 = memref.load %arg0[%c1_142, %c4_143] : memref<3x8xf32, #tpu.memory_space<smem>>
    %342 = vector.broadcast %341 : f32 to vector<8x15xf32>
    %343 = arith.mulf %342, %2 : vector<8x15xf32>
    %c1_144 = arith.constant 1 : index
    %c5_145 = arith.constant 5 : index
    %344 = memref.load %arg0[%c1_144, %c5_145] : memref<3x8xf32, #tpu.memory_space<smem>>
    %345 = vector.broadcast %344 : f32 to vector<8x15xf32>
    %346 = arith.mulf %345, %3 : vector<8x15xf32>
    %347 = arith.addf %343, %346 : vector<8x15xf32>
    %c1_146 = arith.constant 1 : index
    %c6_147 = arith.constant 6 : index
    %348 = memref.load %arg0[%c1_146, %c6_147] : memref<3x8xf32, #tpu.memory_space<smem>>
    %349 = vector.broadcast %348 : f32 to vector<8x15xf32>
    %350 = arith.mulf %349, %4 : vector<8x15xf32>
    %351 = arith.addf %347, %350 : vector<8x15xf32>
    %c1_148 = arith.constant 1 : index
    %c7_149 = arith.constant 7 : index
    %352 = memref.load %arg0[%c1_148, %c7_149] : memref<3x8xf32, #tpu.memory_space<smem>>
    %353 = vector.broadcast %352 : f32 to vector<8x15xf32>
    %354 = arith.mulf %353, %5 : vector<8x15xf32>
    %355 = arith.addf %351, %354 : vector<8x15xf32>
    %c2_150 = arith.constant 2 : index
    %c1_151 = arith.constant 1 : index
    %356 = memref.load %arg1[%c2_150, %c1_151] : memref<3x3xf32, #tpu.memory_space<smem>>
    %357 = vector.broadcast %356 : f32 to vector<8x15xf32>
    %358 = arith.addf %355, %357 : vector<8x15xf32>
    %c2_152 = arith.constant 2 : index
    %c1_153 = arith.constant 1 : index
    %359 = memref.load %arg2[%c2_152, %c1_153] : memref<3x3xf32, #tpu.memory_space<smem>>
    %c2_154 = arith.constant 2 : index
    %c1_155 = arith.constant 1 : index
    %360 = memref.load %arg3[%c2_154, %c1_155] : memref<3x3xf32, #tpu.memory_space<smem>>
    %361 = vector.shape_cast %358 : vector<8x15xf32> to vector<1x8x15xf32>
    %cst_156 = arith.constant dense<0.000000e+00> : vector<1xf32>
    %362 = vector.multi_reduction <add>, %361, %cst_156 [1, 2] : vector<1x8x15xf32> to vector<1xf32>
    %363 = vector.shape_cast %362 : vector<1xf32> to vector<1x1x1xf32>
    %364 = vector.extract %363[0, 0, 0] : f32 from vector<1x1x1xf32>
    %cst_157 = arith.constant 0.000000e+00 : f32
    %365 = arith.addf %cst_157, %364 : f32
    %366 = arith.mulf %358, %358 : vector<8x15xf32>
    %367 = vector.shape_cast %366 : vector<8x15xf32> to vector<1x8x15xf32>
    %cst_158 = arith.constant dense<0.000000e+00> : vector<1xf32>
    %368 = vector.multi_reduction <add>, %367, %cst_158 [1, 2] : vector<1x8x15xf32> to vector<1xf32>
    %369 = vector.shape_cast %368 : vector<1xf32> to vector<1x1x1xf32>
    %370 = vector.extract %369[0, 0, 0] : f32 from vector<1x1x1xf32>
    %cst_159 = arith.constant 0.000000e+00 : f32
    %371 = arith.addf %cst_159, %370 : f32
    %cst_160 = arith.constant 1.200000e+02 : f32
    %372 = arith.divf %365, %cst_160 : f32
    %cst_161 = arith.constant 1.200000e+02 : f32
    %373 = arith.divf %371, %cst_161 : f32
    %374 = arith.mulf %372, %372 : f32
    %375 = arith.subf %373, %374 : f32
    %cst_162 = arith.constant 9.99999974E-6 : f32
    %376 = arith.addf %375, %cst_162 : f32
    %377 = math.rsqrt %376 : f32
    %378 = arith.mulf %359, %377 : f32
    %379 = arith.mulf %372, %378 : f32
    %380 = arith.subf %360, %379 : f32
    %381 = vector.broadcast %378 : f32 to vector<8x15xf32>
    %382 = arith.mulf %358, %381 : vector<8x15xf32>
    %383 = vector.broadcast %380 : f32 to vector<8x15xf32>
    %384 = arith.addf %382, %383 : vector<8x15xf32>
    %c2_163 = arith.constant 2 : index
    %c4_164 = arith.constant 4 : index
    %385 = memref.load %arg0[%c2_163, %c4_164] : memref<3x8xf32, #tpu.memory_space<smem>>
    %386 = vector.broadcast %385 : f32 to vector<8x15xf32>
    %387 = arith.mulf %386, %2 : vector<8x15xf32>
    %c2_165 = arith.constant 2 : index
    %c5_166 = arith.constant 5 : index
    %388 = memref.load %arg0[%c2_165, %c5_166] : memref<3x8xf32, #tpu.memory_space<smem>>
    %389 = vector.broadcast %388 : f32 to vector<8x15xf32>
    %390 = arith.mulf %389, %3 : vector<8x15xf32>
    %391 = arith.addf %387, %390 : vector<8x15xf32>
    %c2_167 = arith.constant 2 : index
    %c6_168 = arith.constant 6 : index
    %392 = memref.load %arg0[%c2_167, %c6_168] : memref<3x8xf32, #tpu.memory_space<smem>>
    %393 = vector.broadcast %392 : f32 to vector<8x15xf32>
    %394 = arith.mulf %393, %4 : vector<8x15xf32>
    %395 = arith.addf %391, %394 : vector<8x15xf32>
    %c2_169 = arith.constant 2 : index
    %c7_170 = arith.constant 7 : index
    %396 = memref.load %arg0[%c2_169, %c7_170] : memref<3x8xf32, #tpu.memory_space<smem>>
    %397 = vector.broadcast %396 : f32 to vector<8x15xf32>
    %398 = arith.mulf %397, %5 : vector<8x15xf32>
    %399 = arith.addf %395, %398 : vector<8x15xf32>
    %c2_171 = arith.constant 2 : index
    %c2_172 = arith.constant 2 : index
    %400 = memref.load %arg1[%c2_171, %c2_172] : memref<3x3xf32, #tpu.memory_space<smem>>
    %401 = vector.broadcast %400 : f32 to vector<8x15xf32>
    %402 = arith.addf %399, %401 : vector<8x15xf32>
    %c2_173 = arith.constant 2 : index
    %c2_174 = arith.constant 2 : index
    %403 = memref.load %arg2[%c2_173, %c2_174] : memref<3x3xf32, #tpu.memory_space<smem>>
    %c2_175 = arith.constant 2 : index
    %c2_176 = arith.constant 2 : index
    %404 = memref.load %arg3[%c2_175, %c2_176] : memref<3x3xf32, #tpu.memory_space<smem>>
    %405 = vector.shape_cast %402 : vector<8x15xf32> to vector<1x8x15xf32>
    %cst_177 = arith.constant dense<0.000000e+00> : vector<1xf32>
    %406 = vector.multi_reduction <add>, %405, %cst_177 [1, 2] : vector<1x8x15xf32> to vector<1xf32>
    %407 = vector.shape_cast %406 : vector<1xf32> to vector<1x1x1xf32>
    %408 = vector.extract %407[0, 0, 0] : f32 from vector<1x1x1xf32>
    %cst_178 = arith.constant 0.000000e+00 : f32
    %409 = arith.addf %cst_178, %408 : f32
    %410 = arith.mulf %402, %402 : vector<8x15xf32>
    %411 = vector.shape_cast %410 : vector<8x15xf32> to vector<1x8x15xf32>
    %cst_179 = arith.constant dense<0.000000e+00> : vector<1xf32>
    %412 = vector.multi_reduction <add>, %411, %cst_179 [1, 2] : vector<1x8x15xf32> to vector<1xf32>
    %413 = vector.shape_cast %412 : vector<1xf32> to vector<1x1x1xf32>
    %414 = vector.extract %413[0, 0, 0] : f32 from vector<1x1x1xf32>
    %cst_180 = arith.constant 0.000000e+00 : f32
    %415 = arith.addf %cst_180, %414 : f32
    %cst_181 = arith.constant 1.200000e+02 : f32
    %416 = arith.divf %409, %cst_181 : f32
    %cst_182 = arith.constant 1.200000e+02 : f32
    %417 = arith.divf %415, %cst_182 : f32
    %418 = arith.mulf %416, %416 : f32
    %419 = arith.subf %417, %418 : f32
    %cst_183 = arith.constant 9.99999974E-6 : f32
    %420 = arith.addf %419, %cst_183 : f32
    %421 = math.rsqrt %420 : f32
    %422 = arith.mulf %403, %421 : f32
    %423 = arith.mulf %416, %422 : f32
    %424 = arith.subf %404, %423 : f32
    %425 = vector.broadcast %422 : f32 to vector<8x15xf32>
    %426 = arith.mulf %402, %425 : vector<8x15xf32>
    %427 = vector.broadcast %424 : f32 to vector<8x15xf32>
    %428 = arith.addf %426, %427 : vector<8x15xf32>
    %c0_184 = arith.constant 0 : index
    %c0_185 = arith.constant 0 : index
    %c0_186 = arith.constant 0 : index
    %429 = vector.load %arg7[%c0_184, %c0_185, %c0_186] : memref<12x16x48xf32, #tpu.memory_space<vmem>>, vector<1x16x48xf32>
    %430 = vector.shape_cast %429 : vector<1x16x48xf32> to vector<16x48xf32>
    %cst_187 = arith.constant dense<0.000000e+00> : vector<8x48xf32>
    %431 = tpu.matmul %41, %430, %cst_187 {dimension_numbers = #tpu.dot_dimension_numbers<[1], [0], [0], [1], [0, 0, 1, 1], [], []>, precision = #tpu.contract_precision<fp32>} : vector<8x16xf32>, vector<16x48xf32>, vector<8x48xf32> -> vector<8x48xf32>
    %c1_188 = arith.constant 1 : index
    %c0_189 = arith.constant 0 : index
    %c0_190 = arith.constant 0 : index
    %432 = vector.load %arg7[%c1_188, %c0_189, %c0_190] : memref<12x16x48xf32, #tpu.memory_space<vmem>>, vector<1x16x48xf32>
    %433 = vector.shape_cast %432 : vector<1x16x48xf32> to vector<16x48xf32>
    %cst_191 = arith.constant dense<0.000000e+00> : vector<8x48xf32>
    %434 = tpu.matmul %77, %433, %cst_191 {dimension_numbers = #tpu.dot_dimension_numbers<[1], [0], [0], [1], [0, 0, 1, 1], [], []>, precision = #tpu.contract_precision<fp32>} : vector<8x16xf32>, vector<16x48xf32>, vector<8x48xf32> -> vector<8x48xf32>
    %435 = arith.addf %431, %434 : vector<8x48xf32>
    %c2_192 = arith.constant 2 : index
    %c0_193 = arith.constant 0 : index
    %c0_194 = arith.constant 0 : index
    %436 = vector.load %arg7[%c2_192, %c0_193, %c0_194] : memref<12x16x48xf32, #tpu.memory_space<vmem>>, vector<1x16x48xf32>
    %437 = vector.shape_cast %436 : vector<1x16x48xf32> to vector<16x48xf32>
    %cst_195 = arith.constant dense<0.000000e+00> : vector<8x48xf32>
    %438 = tpu.matmul %113, %437, %cst_195 {dimension_numbers = #tpu.dot_dimension_numbers<[1], [0], [0], [1], [0, 0, 1, 1], [], []>, precision = #tpu.contract_precision<fp32>} : vector<8x16xf32>, vector<16x48xf32>, vector<8x48xf32> -> vector<8x48xf32>
    %439 = arith.addf %435, %438 : vector<8x48xf32>
    %c3_196 = arith.constant 3 : index
    %c0_197 = arith.constant 0 : index
    %c0_198 = arith.constant 0 : index
    %440 = vector.load %arg7[%c3_196, %c0_197, %c0_198] : memref<12x16x48xf32, #tpu.memory_space<vmem>>, vector<1x16x48xf32>
    %441 = vector.shape_cast %440 : vector<1x16x48xf32> to vector<16x48xf32>
    %442 = vector.extract_strided_slice %441 {offsets = [0, 0], sizes = [15, 48], strides = [1, 1]} : vector<16x48xf32> to vector<15x48xf32>
    %cst_199 = arith.constant dense<0.000000e+00> : vector<8x48xf32>
    %443 = tpu.matmul %170, %442, %cst_199 {dimension_numbers = #tpu.dot_dimension_numbers<[1], [0], [0], [1], [0, 0, 1, 1], [], []>, precision = #tpu.contract_precision<fp32>} : vector<8x15xf32>, vector<15x48xf32>, vector<8x48xf32> -> vector<8x48xf32>
    %444 = arith.addf %439, %443 : vector<8x48xf32>
    %c4_200 = arith.constant 4 : index
    %c0_201 = arith.constant 0 : index
    %c0_202 = arith.constant 0 : index
    %445 = vector.load %arg7[%c4_200, %c0_201, %c0_202] : memref<12x16x48xf32, #tpu.memory_space<vmem>>, vector<1x16x48xf32>
    %446 = vector.shape_cast %445 : vector<1x16x48xf32> to vector<16x48xf32>
    %447 = vector.extract_strided_slice %446 {offsets = [0, 0], sizes = [15, 48], strides = [1, 1]} : vector<16x48xf32> to vector<15x48xf32>
    %cst_203 = arith.constant dense<0.000000e+00> : vector<8x48xf32>
    %448 = tpu.matmul %174, %447, %cst_203 {dimension_numbers = #tpu.dot_dimension_numbers<[1], [0], [0], [1], [0, 0, 1, 1], [], []>, precision = #tpu.contract_precision<fp32>} : vector<8x15xf32>, vector<15x48xf32>, vector<8x48xf32> -> vector<8x48xf32>
    %449 = arith.addf %444, %448 : vector<8x48xf32>
    %c5_204 = arith.constant 5 : index
    %c0_205 = arith.constant 0 : index
    %c0_206 = arith.constant 0 : index
    %450 = vector.load %arg7[%c5_204, %c0_205, %c0_206] : memref<12x16x48xf32, #tpu.memory_space<vmem>>, vector<1x16x48xf32>
    %451 = vector.shape_cast %450 : vector<1x16x48xf32> to vector<16x48xf32>
    %452 = vector.extract_strided_slice %451 {offsets = [0, 0], sizes = [15, 48], strides = [1, 1]} : vector<16x48xf32> to vector<15x48xf32>
    %cst_207 = arith.constant dense<0.000000e+00> : vector<8x48xf32>
    %453 = tpu.matmul %231, %452, %cst_207 {dimension_numbers = #tpu.dot_dimension_numbers<[1], [0], [0], [1], [0, 0, 1, 1], [], []>, precision = #tpu.contract_precision<fp32>} : vector<8x15xf32>, vector<15x48xf32>, vector<8x48xf32> -> vector<8x48xf32>
    %454 = arith.addf %449, %453 : vector<8x48xf32>
    %c6_208 = arith.constant 6 : index
    %c0_209 = arith.constant 0 : index
    %c0_210 = arith.constant 0 : index
    %455 = vector.load %arg7[%c6_208, %c0_209, %c0_210] : memref<12x16x48xf32, #tpu.memory_space<vmem>>, vector<1x16x48xf32>
    %456 = vector.shape_cast %455 : vector<1x16x48xf32> to vector<16x48xf32>
    %457 = vector.extract_strided_slice %456 {offsets = [0, 0], sizes = [15, 48], strides = [1, 1]} : vector<16x48xf32> to vector<15x48xf32>
    %cst_211 = arith.constant dense<0.000000e+00> : vector<8x48xf32>
    %458 = tpu.matmul %235, %457, %cst_211 {dimension_numbers = #tpu.dot_dimension_numbers<[1], [0], [0], [1], [0, 0, 1, 1], [], []>, precision = #tpu.contract_precision<fp32>} : vector<8x15xf32>, vector<15x48xf32>, vector<8x48xf32> -> vector<8x48xf32>
    %459 = arith.addf %454, %458 : vector<8x48xf32>
    %c7_212 = arith.constant 7 : index
    %c0_213 = arith.constant 0 : index
    %c0_214 = arith.constant 0 : index
    %460 = vector.load %arg7[%c7_212, %c0_213, %c0_214] : memref<12x16x48xf32, #tpu.memory_space<vmem>>, vector<1x16x48xf32>
    %461 = vector.shape_cast %460 : vector<1x16x48xf32> to vector<16x48xf32>
    %462 = vector.extract_strided_slice %461 {offsets = [0, 0], sizes = [15, 48], strides = [1, 1]} : vector<16x48xf32> to vector<15x48xf32>
    %cst_215 = arith.constant dense<0.000000e+00> : vector<8x48xf32>
    %463 = tpu.matmul %292, %462, %cst_215 {dimension_numbers = #tpu.dot_dimension_numbers<[1], [0], [0], [1], [0, 0, 1, 1], [], []>, precision = #tpu.contract_precision<fp32>} : vector<8x15xf32>, vector<15x48xf32>, vector<8x48xf32> -> vector<8x48xf32>
    %464 = arith.addf %459, %463 : vector<8x48xf32>
    %c8 = arith.constant 8 : index
    %c0_216 = arith.constant 0 : index
    %c0_217 = arith.constant 0 : index
    %465 = vector.load %arg7[%c8, %c0_216, %c0_217] : memref<12x16x48xf32, #tpu.memory_space<vmem>>, vector<1x16x48xf32>
    %466 = vector.shape_cast %465 : vector<1x16x48xf32> to vector<16x48xf32>
    %467 = vector.extract_strided_slice %466 {offsets = [0, 0], sizes = [15, 48], strides = [1, 1]} : vector<16x48xf32> to vector<15x48xf32>
    %cst_218 = arith.constant dense<0.000000e+00> : vector<8x48xf32>
    %468 = tpu.matmul %296, %467, %cst_218 {dimension_numbers = #tpu.dot_dimension_numbers<[1], [0], [0], [1], [0, 0, 1, 1], [], []>, precision = #tpu.contract_precision<fp32>} : vector<8x15xf32>, vector<15x48xf32>, vector<8x48xf32> -> vector<8x48xf32>
    %469 = arith.addf %464, %468 : vector<8x48xf32>
    %c9 = arith.constant 9 : index
    %c0_219 = arith.constant 0 : index
    %c0_220 = arith.constant 0 : index
    %470 = vector.load %arg7[%c9, %c0_219, %c0_220] : memref<12x16x48xf32, #tpu.memory_space<vmem>>, vector<1x16x48xf32>
    %471 = vector.shape_cast %470 : vector<1x16x48xf32> to vector<16x48xf32>
    %472 = vector.extract_strided_slice %471 {offsets = [0, 0], sizes = [15, 48], strides = [1, 1]} : vector<16x48xf32> to vector<15x48xf32>
    %cst_221 = arith.constant dense<0.000000e+00> : vector<8x48xf32>
    %473 = tpu.matmul %340, %472, %cst_221 {dimension_numbers = #tpu.dot_dimension_numbers<[1], [0], [0], [1], [0, 0, 1, 1], [], []>, precision = #tpu.contract_precision<fp32>} : vector<8x15xf32>, vector<15x48xf32>, vector<8x48xf32> -> vector<8x48xf32>
    %474 = arith.addf %469, %473 : vector<8x48xf32>
    %c10 = arith.constant 10 : index
    %c0_222 = arith.constant 0 : index
    %c0_223 = arith.constant 0 : index
    %475 = vector.load %arg7[%c10, %c0_222, %c0_223] : memref<12x16x48xf32, #tpu.memory_space<vmem>>, vector<1x16x48xf32>
    %476 = vector.shape_cast %475 : vector<1x16x48xf32> to vector<16x48xf32>
    %477 = vector.extract_strided_slice %476 {offsets = [0, 0], sizes = [15, 48], strides = [1, 1]} : vector<16x48xf32> to vector<15x48xf32>
    %cst_224 = arith.constant dense<0.000000e+00> : vector<8x48xf32>
    %478 = tpu.matmul %384, %477, %cst_224 {dimension_numbers = #tpu.dot_dimension_numbers<[1], [0], [0], [1], [0, 0, 1, 1], [], []>, precision = #tpu.contract_precision<fp32>} : vector<8x15xf32>, vector<15x48xf32>, vector<8x48xf32> -> vector<8x48xf32>
    %479 = arith.addf %474, %478 : vector<8x48xf32>
    %c11 = arith.constant 11 : index
    %c0_225 = arith.constant 0 : index
    %c0_226 = arith.constant 0 : index
    %480 = vector.load %arg7[%c11, %c0_225, %c0_226] : memref<12x16x48xf32, #tpu.memory_space<vmem>>, vector<1x16x48xf32>
    %481 = vector.shape_cast %480 : vector<1x16x48xf32> to vector<16x48xf32>
    %482 = vector.extract_strided_slice %481 {offsets = [0, 0], sizes = [15, 48], strides = [1, 1]} : vector<16x48xf32> to vector<15x48xf32>
    %cst_227 = arith.constant dense<0.000000e+00> : vector<8x48xf32>
    %483 = tpu.matmul %428, %482, %cst_227 {dimension_numbers = #tpu.dot_dimension_numbers<[1], [0], [0], [1], [0, 0, 1, 1], [], []>, precision = #tpu.contract_precision<fp32>} : vector<8x15xf32>, vector<15x48xf32>, vector<8x48xf32> -> vector<8x48xf32>
    %484 = arith.addf %479, %483 : vector<8x48xf32>
    %c0_228 = arith.constant 0 : index
    %c0_229 = arith.constant 0 : index
    %485 = vector.load %arg8[%c0_228, %c0_229] : memref<1x48xf32, #tpu.memory_space<vmem>>, vector<1x48xf32>
    %486 = vector.broadcast %485 : vector<1x48xf32> to vector<8x48xf32>
    %487 = arith.addf %484, %486 : vector<8x48xf32>
    %cst_230 = arith.constant 0.000000e+00 : f32
    %488 = vector.broadcast %cst_230 : f32 to vector<8x48xf32>
    %489 = arith.maximumf %487, %488 : vector<8x48xf32>
    %c0_231 = arith.constant 0 : index
    %c0_232 = arith.constant 0 : index
    %490 = vector.load %arg9[%c0_231, %c0_232] : memref<1x48xf32, #tpu.memory_space<vmem>>, vector<1x48xf32>
    %491 = vector.broadcast %490 : vector<1x48xf32> to vector<8x48xf32>
    %492 = arith.mulf %489, %491 : vector<8x48xf32>
    %cst_233 = arith.constant dense<0.000000e+00> : vector<8xf32>
    %493 = vector.multi_reduction <add>, %492, %cst_233 [1] : vector<8x48xf32> to vector<8xf32>
    %494 = vector.shape_cast %493 : vector<8xf32> to vector<8x1xf32>
    %c0_234 = arith.constant 0 : index
    %c0_235 = arith.constant 0 : index
    %495 = memref.load %arg4[%c0_234, %c0_235] : memref<1x1xf32, #tpu.memory_space<smem>>
    %496 = vector.broadcast %495 : f32 to vector<8x1xf32>
    %497 = arith.addf %494, %496 : vector<8x1xf32>
    %c0_236 = arith.constant 0 : index
    %c0_237 = arith.constant 0 : index
    %498 = vector.load %arg10[%c0_236, %c0_237] : memref<8x1xf32, #tpu.memory_space<vmem>>, vector<8x1xf32>
    tpu.vector_store %arg10[%c0_236, %c0_237], %497 {strides = array<i32>} : memref<8x1xf32, #tpu.memory_space<vmem>>, vector<8x1xf32>,
    return
  }
}

</mosaic_0001>

<bundles_post_ra>
// kernel: tpu_custom_call.1
= control target key start
LH: loop header
LB: loop body
LE: loop exit
PB: predicated region body
PF: predicated region fallthrough
CT: control target
= control target key end

     0   :  { %16 = vsyncpa [#allocation5], 0  ;;  %s3802_s0 = inlined_call_operand.hbm [shape: f32[3,8], index: 0, kind: input, shape index: {}]   ;;  %s3803_s1 = inlined_call_operand.hbm [shape: f32[3,3], index: 1, kind: input, shape index: {}]   ;;  %s3804_s2 = inlined_call_operand.hbm [shape: f32[3,3], index: 2, kind: input, shape index: {}]   ;;  %s3805_s3 = inlined_call_operand.vmem [shape: f32[3,3], index: 3, kind: input, shape index: {}]   ;;  %s3806_s4 = inlined_call_operand.<no memory space> [shape: f32[1,1], index: 4, kind: input, shape index: {}]   ;;  %s3807_s5 = inlined_call_operand.hbm [shape: f32[8,16], index: 5, kind: input, shape index: {}]   ;;  %s3808_s6 = inlined_call_operand.hbm [shape: f32[8,16], index: 6, kind: input, shape index: {}]   ;;  %s3809_s7 = inlined_call_operand.hbm [shape: f32[12,16,48], index: 7, kind: input, shape index: {}]   ;;  %s3810_s8 = inlined_call_operand.vmem [shape: f32[1,48], index: 8, kind: input, shape index: {}]   ;;  %s3811_s9 = inlined_call_operand.vmem [shape: f32[1,48], index: 9, kind: input, shape index: {}]   ;;  %s3812_s10 = inlined_call_operand.vmem [shape: f32[8,1], index: 10, kind: output, shape index: {}]  }
   0x1   :  { %17 = vsyncpa [#allocation8], 0 }
   0x2   :  { %18 = vsyncpa [#allocation6], 0 }
   0x3   :  { %19 = vsyncpa [#allocation4], 0  ;;  %s35_s15 = sshll.u32 %s3803_s1, 4  ;;  %s36_s15 = int_to_ptr.hbm [resolvable:$true] %s35_s15 }
   0x4   :  { %20 = vsyncpa [#allocation13], 0  ;;  %s75_s18 = sshll.u32 %s3808_s6, 4  ;;  %s3301_s19 = smov [#allocation7]   ;;  %s76_s18 = int_to_ptr.hbm [resolvable:$true] %s75_s18 }
   0x5   :  { %38 = dma.hbm_to_smem %s36_s15, 64, %s3301_s19, [#allocation8]  }
   0x6   :  { %s3302_s20 = smov [#allocation12]   ;;  %s26_s24 = sshll.u32 %s3802_s0, 4  ;;  %s27_s24 = int_to_ptr.hbm [resolvable:$true] %s26_s24 }
   0x7   :  { %s77_s21 = sshll.u32 %s3302_s20, 4  ;;  %s44_s26 = sshll.u32 %s3804_s2, 4  ;;  %s78_s21 = int_to_ptr.vmem [resolvable:$true] %s77_s21  ;;  %s45_s26 = int_to_ptr.hbm [resolvable:$true] %s44_s26 }
   0x8   :  { %80 = dma.hbm_to_vmem [thread:$0]  %s76_s18, 128, %s78_s21, [#allocation13]  }
   0x9   :  { %s3303_s27 = smov [#allocation3]   ;;  %s3304_s6 = smov [#allocation9]  }
   0xa   :  { %29 = dma.hbm_to_smem %s27_s24, 64, %s3303_s27, [#allocation5]  }
   0xb   :  { %47 = dma.hbm_to_smem %s45_s26, 64, %s3304_s6, [#allocation8]  }
   0xc   :  { %s53_s30 = sshll.u32 %s3805_s3, 4  ;;  %s64_s0 = sshll.u32 %s3807_s5, 4  ;;  %s54_s30 = int_to_ptr.vmem [resolvable:$true] %s53_s30  ;;  %s65_s0 = int_to_ptr.hbm [resolvable:$true] %s64_s0 }
   0xd   :  { %s3305_s13 = smov [#allocation10]   ;;  %s3306_s14 = smov [#allocation11]  }
   0xe   :  { %56 = dma.vmem_to_smem %s54_s30, 64, %s3305_s13, [#allocation6]  }
   0xf   :  { %s66_s15 = sshll.u32 %s3306_s14, 4  ;;  %s85_s17 = sshll.u32 %s3809_s7, 4  ;;  %s67_s15 = int_to_ptr.vmem [resolvable:$true] %s66_s15  ;;  %s86_s17 = int_to_ptr.hbm [resolvable:$true] %s85_s17 }
  0x10   :  { %69 = dma.hbm_to_vmem [thread:$0]  %s65_s0, 128, %s67_s15, [#allocation4]  }
  0x11   :  { %s3307_s18 = smov [#allocation14]   ;;  %s3308_s3 = smov 128  }
  0x12   :  { %s87_s19 = sshll.u32 %s3307_s18, 4  ;;  %s3309_s20 = smov 8   ;;  %s88_s19 = int_to_ptr.vmem [resolvable:$true] %s87_s19 }
  0x13   :  { %93 = dma.hbm_to_vmem [thread:$0]  %s86_s17, 3072, %s88_s19, [#allocation13], %s3308_s3, %s3308_s3, %s3309_s20  }
  0x14   :  { %3291 = dma.done.wait [#allocation5], 64  }
  0x15   :  { %3292 = vsyncadd [#allocation5], 4294967232 }
  0x16   :  { %3293 = dma.done.wait [#allocation8], 128  }
  0x17   :  { %3294 = vsyncadd [#allocation8], 4294967168 }
  0x18   :  { %3295 = dma.done.wait [#allocation6], 64  }
  0x19   :  { %3296 = vsyncadd [#allocation6], 4294967232 }
  0x1a   :  { %3297 = dma.done.wait [#allocation4], 128  }
  0x1b   :  { %3298 = vsyncadd [#allocation4], 4294967168 }
  0x1c   :  { %3299 = dma.done.wait [#allocation13], 3200  }
  0x1d   :  { %3300 = vsyncadd [#allocation13], 4294964096 }
  0x1e   :  { %126 = sfence }
  0x1f   :  { %s3012_s5 = sld [smem:[#allocation3 + $0x80]]  ;;  %v3390_v0 = vld [vmem:[#allocation11] sm:$0xff]  ;;  %v3392_v1 = vld [vmem:[#allocation12] sm:$0xff]  ;;  %vm141_vm0 = vcmask 130048   ;;  %s3310_s1 = smov 127   ;;  %v3311_v35 = vmov 128.0  }
  0x20   :  { %s3013_s7 = sld [smem:[#allocation3 + $0x81]]  ;;  %3145 = vrcp.f32 %v3311_v35  ;;  %vm379_vm2 = vcmask 121856  }
  0x21   :  { %s3014_s21 = sld [smem:[#allocation7 + $0x1]] }
  0x22   :  { %s129_s22 = sld [smem:[#allocation3]] }
  0x23   :  { %s3011_s23 = sld [smem:[#allocation3 + $0x1]] }
  0x24   :  { %s136_s24 = sld [smem:[#allocation7]] }
  0x25   :  { %v206_v2 = vstv %s3012_s5  ;;  %s3023_s25 = sld [smem:[#allocation3 + $0x3]] }
  0x26   :  { %v207_v3 = vmul.f32 %v206_v2, %v3390_v0  ;;  %v209_v4 = vstv %s3013_s7  ;;  %s3017_s26 = sld [smem:[#allocation3 + $0x100]]  ;;  %v3146_v36 = vpop.eup %3145 }
  0x27   :  { %v210_v5 = vmul.f32 %v209_v4, %v3392_v1  ;;  %v213_v6 = vstv %s3014_s21  ;;  %s3018_s27 = sld [smem:[#allocation3 + $0x101]]  ;;  %v166_v40 = vmul.f32 128.0, %v3146_v36  ;;  %vm170_vm1 = vweird.f32 %v3146_v36 }
  0x28   :  { %v130_v7 = vstv %s129_s22  ;;  %s3019_s6 = sld [smem:[#allocation7 + $0x2]] }
  0x29   :  { %v211_v8 = vadd.f32 %v210_v5, %v207_v3  ;;  %v131_v9 = vmul.f32 %v130_v7, %v3390_v0  ;;  %v133_v10 = vstv %s3011_s23  ;;  %v167_v43 = vsub.f32 1.0, %v166_v40  ;;  %s3022_s28 = sld [smem:[#allocation3 + $0x2]] }
  0x2a   :  { %v134_v11 = vmul.f32 %v133_v10, %v3392_v1  ;;  %v137_v13 = vstv %s136_s24  ;;  %s3024_s29 = sld [smem:[#allocation7 + $0x80]] }
  0x2b   :  { %v3398_v12 = vadd.f32 %v213_v6, %v211_v8  ;;  %v359_v22 = vstv %s3023_s25  ;;  %v168_v50 = vmul.f32 %v3146_v36, %v167_v43  ;;  %s3028_s30 = sld [smem:[#allocation3 + $0x83]] }
  0x2c   :  { %v135_v14 = vadd.f32 %v134_v11, %v131_v9  ;;  %v360_v23 = vmul.f32 %v359_v22, %v3390_v0  ;;  %v370_v24 = vmul.f32 %v359_v22, %v3392_v1  ;;  %v281_v25 = vstv %s3017_s26  ;;  %s3453_s17 = sld [smem:[#allocation3 + $0x82]] }
  0x2d   :  { %v217_v15 = vsel %vm141_vm0, %v3398_v12, 0.0  ;;  %v228_v17 = vmul.f32 %v3398_v12, %v3398_v12  ;;  %v284_v26 = vstv %s3018_s27  ;;  %v282_v27 = vmul.f32 %v281_v25, %v3390_v0  ;;  %s3455_s18 = sld [smem:[#allocation7 + $0x81]] }
  0x2e   :  { %218 = vadd.xlane.f32.xlu1 %v217_v15  ;;  %v3402_v16 = vadd.f32 %v137_v13, %v135_v14  ;;  %v285_v28 = vmul.f32 %v284_v26, %v3392_v1  ;;  %v288_v30 = vstv %s3019_s6  ;;  %v169_v53 = vadd.f32 %v3146_v36, %v168_v50  ;;  %s3033_s24 = sld [smem:[#allocation3 + $0x103]] }
  0x2f   :  { %v229_v20 = vsel %vm141_vm0, %v228_v17, 0.0  ;;  %v356_v58 = vstv %s3022_s28  ;;  %s139_s25 = sld [smem:[#allocation9]] }
  0x30   :  { %v142_v18 = vsel %vm141_vm0, %v3402_v16, 0.0  ;;  %v153_v19 = vmul.f32 %v3402_v16, %v3402_v16  ;;  %v286_v29 = vadd.f32 %v285_v28, %v282_v27  ;;  %v171_v56 = vsel %vm170_vm1, %v3146_v36, %v169_v53  ;;  %s140_s26 = sld [smem:[#allocation10]] }
  0x31   :  { %143 = vadd.xlane.f32.xlu0 %v142_v18  ;;  %v357_v59 = vmul.f32 %v356_v58, %v3390_v0  ;;  %v369_v60 = vmul.f32 %v356_v58, %v3392_v1  ;;  %v367_v61 = vstv %s3024_s29  ;;  %v472_v3 = vstv %s3028_s30  ;;  %s3015_s29 = sld [smem:[#allocation9 + $0x1]] }
  0x32   :  { %v154_v21 = vsel %vm141_vm0, %v153_v19, 0.0  ;;  %v3418_v31 = vadd.f32 %v288_v30, %v286_v29  ;;  %v483_v6 = vmul.f32 %v472_v3, %v3392_v1  ;;  %v473_v15 = vmul.f32 %v472_v3, %v3390_v0  ;;  %s3016_s30 = sld [smem:[#allocation10 + $0x1]] }
  0x33   :  { %v469_v40 = vstv %s3453_s17 }
  0x34   :  { %v292_v32 = vsel %vm141_vm0, %v3418_v31, 0.0  ;;  %v303_v33 = vmul.f32 %v3418_v31, %v3418_v31 }
  0x35   :  { %293 = vadd.xlane.f32.xlu2 %v292_v32 }
  0x36   :  { %230 = vadd.xlane.f32.xlu1 %v229_v20  ;;  %v304_v34 = vsel %vm141_vm0, %v303_v33, 0.0 }
  0x39   :  { %155 = vadd.xlane.f32.xlu0 %v154_v21 }
  0x3d   :  { %305 = vadd.xlane.f32.xlu2 %v304_v34 }
  0x4d   :  { %362 = vrot.lane.b32.xlu0 %v360_v23, %s3310_s1 }
  0x4f   :  { %372 = vrot.lane.b32.xlu1 %v370_v24, %s3310_s1 }
  0x57   :  { %485 = vrot.lane.b32.xlu1 %v483_v6, %s3310_s1 }
  0xa1   :  { %v219_v47 = vpop.xlane.xlu1 %218 }
  0xa2   :  { %v220_v17 = vrot.slane %v219_v47, 4 }
  0xa4   :  { %v144_v37 = vpop.xlane.xlu0 %143  ;;  %v221_v20 = vadd.f32 %v220_v17, %v219_v47 }
  0xa5   :  { %v145_v38 = vrot.slane %v144_v37, 4 }
  0xa6   :  { %v222_v22 = vrot.slane %v221_v20, 2 }
  0xa7   :  { %v146_v39 = vadd.f32 %v145_v38, %v144_v37 }
  0xa8   :  { %v223_v27 = vadd.f32 %v222_v22, %v221_v20  ;;  %v294_v38 = vpop.xlane.xlu2 %293  ;;  %v969_v22 = vld [vmem:[#allocation14 + $0x18] sm:$0xff] }
  0xa9   :  { %v147_v41 = vrot.slane %v146_v39, 2  ;;  %v231_v57 = vpop.xlane.xlu1 %230 }
  0xaa   :  { %v232_v18 = vrot.slane %v231_v57, 4  ;;  %v224_v32 = vrot.slane %v223_v27, 1 }
  0xab   :  { %v148_v42 = vadd.f32 %v147_v41, %v146_v39 }
  0xac   :  { %v156_v44 = vpop.xlane.xlu0 %155  ;;  %v233_v21 = vadd.f32 %v232_v18, %v231_v57  ;;  %v225_v36 = vadd.f32 %v224_v32, %v223_v27 }
  0xad   :  { %v157_v45 = vrot.slane %v156_v44, 4  ;;  %v149_v46 = vrot.slane %v148_v42, 1 }
  0xae   :  { %v234_v24 = vrot.slane %v233_v21, 2 }
  0xaf   :  { %v158_v48 = vadd.f32 %v157_v45, %v156_v44  ;;  %v150_v49 = vadd.f32 %v149_v46, %v148_v42  ;;  %v482_v42 = vmul.f32 %v469_v40, %v3392_v1  ;;  %v480_v45 = vstv %s3455_s18 }
  0xb0   :  { %v235_v28 = vadd.f32 %v234_v24, %v233_v21  ;;  %v306_v39 = vpop.xlane.xlu2 %305  ;;  %v584_v21 = vstv %s3033_s24  ;;  %v987_v24 = vand.u32 4294901760, %v969_v22  ;;  %s3554_s24 = sld [smem:[#allocation7 + $0x82]] }
  0xb1   :  { %v159_v51 = vrot.slane %v158_v48, 2  ;;  %3058 = vpush %v150_v49  ;;  %v295_v49 = vrot.slane %v294_v38, 4  ;;  %v307_v50 = vrot.slane %v306_v39, 4 }
  0xb2   :  { %v236_v33 = vrot.slane %v235_v28, 1  ;;  %1072 = vmatpush.msra.mxu3 %v987_v24  ;;  %988 = vmatpush.msra.mxu0 %v987_v24 }
  0xb3   :  { %v160_v52 = vadd.f32 %v159_v51, %v158_v48  ;;  %v308_v53 = vadd.f32 %v307_v50, %v306_v39  ;;  %v965_v39 = vld [vmem:[#allocation14] sm:$0xff] }
  0xb4   :  { %v237_v37 = vadd.f32 %v236_v33, %v235_v28 }
  0xb5   :  { %v161_v54 = vrot.slane %v160_v52, 1  ;;  %v309_v57 = vrot.slane %v308_v53, 2 }
  0xb7   :  { %v162_v55 = vadd.f32 %v161_v54, %v160_v52  ;;  %v296_v52 = vadd.f32 %v295_v49, %v294_v38 }
  0xb9   :  { %3060 = vpush %v162_v55  ;;  %v297_v55 = vrot.slane %v296_v52, 2 }
  0xba   :  { %3062 = vpush %v171_v56 }
  0xbf   :  { %v363_v62 = vpop.permute.xlu0 %362 }
  0xc0   :  { %v365_v63 = vadd.f32 %v363_v62, %v357_v59  ;;  %v310_v62 = vadd.f32 %v309_v57, %v308_v53 }
  0xc1   :  { %v373_v2 = vpop.permute.xlu1 %372 }
  0xc2   :  { %v3427_v4 = vadd.f32 %v367_v61, %v365_v63  ;;  %v375_v5 = vadd.f32 %v373_v2, %v369_v60  ;;  %v470_v60 = vmul.f32 %v469_v40, %v3390_v0  ;;  %v3497_v40 = vand.u32 4294901760, %v965_v39 }
  0xc4   :  { %v3430_v7 = vadd.f32 %v375_v5, %v367_v61  ;;  %v380_v8 = vsel %vm379_vm2, %v3427_v4, 0.0  ;;  %v402_v13 = vmul.f32 %v3427_v4, %v3427_v4  ;;  %v298_v61 = vadd.f32 %v297_v55, %v296_v52 }
  0xc5   :  { %381 = vadd.xlane.f32.xlu2 %v380_v8  ;;  %v311_v8 = vrot.slane %v310_v62, 1 }
  0xc6   :  { %v414_v9 = vmul.f32 %v3430_v7, %v3430_v7  ;;  %v391_v11 = vsel %vm379_vm2, %v3430_v7, 0.0  ;;  %v403_v14 = vsel %vm379_vm2, %v402_v13, 0.0  ;;  %v299_v6 = vrot.slane %v298_v61, 1 }
  0xc7   :  { %v312_v17 = vadd.f32 %v311_v8, %v310_v62 }
  0xc8   :  { %v415_v10 = vsel %vm379_vm2, %v414_v9, 0.0  ;;  %v300_v13 = vadd.f32 %v299_v6, %v298_v61  ;;  %v3312_v61 = vmov 240.0  }
  0xc9   :  { %416 = vadd.xlane.f32.xlu0 %v415_v10  ;;  %v486_v43 = vpop.permute.xlu1 %485 }
  0xca   :  { %v488_v44 = vadd.f32 %v486_v43, %v482_v42 }
  0xcc   :  { %v3469_v46 = vadd.f32 %v488_v44, %v480_v45  ;;  %v3506_v44 = vsub.f32 %v965_v39, %v3497_v40 }
  0xcd   :  { %392 = vadd.xlane.f32.xlu2 %v391_v11 }
  0xce   :  { %v503_v47 = vsel %vm379_vm2, %v3469_v46, 0.0 }
  0xd5   :  { %404 = vadd.xlane.f32.xlu2 %v403_v14 }
  0xe2   :  { %s3059_s11 = spop %3058 }
  0xea   :  { %s3061_s12 = spop %3060 }
  0xeb   :  { %s3444_s0 = spop %3062 }
  0xec   :  { %s3447_s13 = smul.f32 %s3444_s0, %s3059_s11 }
  0xed   :  { %475 = vrot.lane.b32.xlu2 %v473_v15, %s3310_s1  ;;  %s182_s14 = smul.f32 %s3444_s0, %s3061_s12 }
  0xee   :  { %s183_s15 = smul.f32 %s3447_s13, %s3447_s13 }
  0xf0   :  { %s184_s2 = ssub.f32 %s182_s14, %s183_s15 }
  0xf2   :  { %s185_s16 = sadd.f32 1e-05, %s184_s2 }
  0xf4   :  { %v186_v19 = vstv %s185_s16 }
  0xf5   :  { %3147 = vrsqrt.f32 %v186_v19  ;;  %vm193_vm4 = vweird.f32 %v186_v19 }
  0xfb   :  { %v3148_v23 = vpop.eup %3147 }
  0xfc   :  { %v188_v25 = vmul.f32 %v3148_v23, %v186_v19  ;;  %vm194_vm3 = vweird.f32 %v3148_v23  ;;  %v526_v19 = vmul.f32 %v3469_v46, %v3469_v46 }
  0xfd   :  { %vm195_vm5 = vmor %vm193_vm4, %vm194_vm3 }
  0xfe   :  { %v189_v26 = vmul.f32 %v3148_v23, %v188_v25  ;;  %v527_v20 = vsel %vm379_vm2, %v526_v19, 0.0  ;;  %v968_v25 = vld [vmem:[#allocation14 + $0x10] sm:$0xff] }
  0xff   :  { %v989_v27 = vand.u32 4294901760, %v968_v25 }
 0x100   :  { %v190_v29 = vmul.f32 0.5, %v189_v26  ;;  %v1015_v26 = vsub.f32 %v969_v22, %v987_v24 }
 0x101   :  { %1074 = vmatpush.msra.mxu3 %v989_v27  ;;  %990 = vmatpush.msra.mxu0 %v989_v27 }
 0x102   :  { %v191_v30 = vsub.f32 1.5, %v190_v29  ;;  %v1016_v28 = vand.u32 4294901760, %v1015_v26  ;;  %v1021_v29 = vsub.f32 %v968_v25, %v989_v27  ;;  %1047 = vmatpush.msra.mxu2 %v1015_v26 }
 0x104   :  { %v192_v34 = vmul.f32 %v3148_v23, %v191_v30  ;;  %v595_v30 = vmul.f32 %v584_v21, %v3392_v1  ;;  %v1017_v32 = vsub.f32 %v1015_v26, %v1016_v28  ;;  %v1022_v33 = vand.u32 4294901760, %v1021_v29  ;;  %1050 = vmatpush.msra.mxu2 %v1021_v29  ;;  %1099 = vmatpush.msrb.mxu0 %v1016_v28 }
 0x106   :  { %v196_v35 = vsel %vm195_vm5, %v3148_v23, %v192_v34  ;;  %v585_v23 = vmul.f32 %v584_v21, %v3390_v0  ;;  %v1018_v34 = vand.u32 4294901760, %v1017_v32  ;;  %1103 = vmatpush.msrb.mxu0 %v1022_v33 }
 0x107   :  { %3064 = vpush %v196_v35  ;;  %v1023_v35 = vsub.f32 %v1021_v29, %v1022_v33 }
 0x108   :  { %3066 = vpush %v225_v36  ;;  %1019 = vmatpush.msra.mxu1 %v1018_v34 }
 0x109   :  { %3068 = vpush %v237_v37  ;;  %v1024_v36 = vand.u32 4294901760, %v1023_v35  ;;  %v966_v37 = vld [vmem:[#allocation14 + $0x8] sm:$0xff] }
 0x10a   :  { %v3494_v38 = vand.u32 4294901760, %v966_v37 }
 0x10b   :  { %1025 = vmatpush.msra.mxu1 %v1024_v36 }
 0x10c   :  { %1150 = vmatpush.msrb.mxu2 %v3494_v38  ;;  %v3500_v42 = vsub.f32 %v966_v37, %v3494_v38 }
 0x10d   :  { %1124 = vmatpush.msrb.mxu1 %v987_v24 }
 0x10e   :  { %1152 = vmatpush.msrb.mxu2 %v3497_v40  ;;  %v1178_v43 = vand.u32 4294901760, %v3500_v42 }
 0x10f   :  { %1126 = vmatpush.msrb.mxu1 %v989_v27 }
 0x116   :  { %504 = vadd.xlane.f32.xlu2 %v503_v47  ;;  %v1184_v47 = vand.u32 4294901760, %v3506_v44 }
 0x118   :  { %v1185_v50 = vsub.f32 %v3506_v44, %v1184_v47 }
 0x11a   :  { %v1186_v52 = vand.u32 4294901760, %v1185_v50 }
 0x138   :  { %s3458_s19 = spop %3064  ;;  %v3460_v41 = vpop.xlane.xlu2 %381 }
 0x139   :  { %s3067_s3 = spop %3066  ;;  %s198_s27 = smul.f32 %s3458_s19, %s139_s25 }
 0x13a   :  { %s3464_s20 = smul.f32 %s3067_s3, %s3444_s0  ;;  %s3069_s5 = spop %3068 }
 0x13b   :  { %s257_s21 = smul.f32 %s3069_s5, %s3444_s0  ;;  %s3552_s5 = sld [smem:[#allocation3 + $0x102]] }
 0x13c   :  { %s258_s7 = smul.f32 %s3464_s20, %s3464_s20 }
 0x13d   :  { %s199_s6 = smul.f32 %s198_s27, %s3447_s13 }
 0x13e   :  { %s259_s22 = ssub.f32 %s257_s21, %s258_s7 }
 0x13f   :  { %s200_s28 = ssub.f32 %s140_s26, %s199_s6 }
 0x140   :  { %v3474_v48 = vpop.xlane.xlu2 %392  ;;  %s260_s23 = sadd.f32 1e-05, %s259_s22 }
 0x141   :  { %v203_v53 = vstv %s200_s28 }
 0x142   :  { %v261_v51 = vstv %s260_s23 }
 0x143   :  { %3149 = vrsqrt.f32 %v261_v51  ;;  %vm268_vm7 = vweird.f32 %v261_v51 }
 0x144   :  { %3151 = vrcp.f32 %v3312_v61 }
 0x148   :  { %v3476_v54 = vpop.xlane.xlu2 %404 }
 0x149   :  { %v3150_v56 = vpop.eup %3149  ;;  %v406_v8 = vrot.slane %v3476_v54, 4 }
 0x14a   :  { %v263_v58 = vmul.f32 %v3150_v56, %v261_v51  ;;  %vm269_vm6 = vweird.f32 %v3150_v56  ;;  %v201_v51 = vstv %s198_s27 }
 0x14b   :  { %vm270_vm8 = vmor %vm268_vm7, %vm269_vm6  ;;  %v202_v55 = vmul.f32 %v201_v51, %v3402_v16  ;;  %v407_v19 = vadd.f32 %v406_v8, %v3476_v54 }
 0x14c   :  { %v264_v59 = vmul.f32 %v3150_v56, %v263_v58 }
 0x14e   :  { %v265_v63 = vmul.f32 0.5, %v264_v59 }
 0x150   :  { %v476_v2 = vpop.permute.xlu2 %475  ;;  %v266_v5 = vsub.f32 1.5, %v265_v63 }
 0x151   :  { %v478_v3 = vadd.f32 %v476_v2, %v470_v60  ;;  %v383_v2 = vrot.slane %v3460_v41, 4 }
 0x152   :  { %v267_v10 = vmul.f32 %v3150_v56, %v266_v5  ;;  %v394_v5 = vrot.slane %v3474_v48, 4 }
 0x153   :  { %v3479_v9 = vadd.f32 %v480_v45, %v478_v3  ;;  %v1179_v45 = vsub.f32 %v3500_v42, %v1178_v43  ;;  %v417_v3 = vpop.xlane.xlu0 %416 }
 0x154   :  { %v271_v11 = vsel %vm270_vm8, %v3150_v56, %v267_v10  ;;  %v204_v56 = vadd.f32 %v203_v53, %v202_v55 }
 0x155   :  { %v492_v14 = vsel %vm379_vm2, %v3479_v9, 0.0  ;;  %v514_v15 = vmul.f32 %v3479_v9, %v3479_v9  ;;  %3070 = vpush %v271_v11  ;;  %v1180_v49 = vand.u32 4294901760, %v1179_v45  ;;  %v418_v11 = vrot.slane %v417_v3, 4 }
 0x156   :  { %493 = vadd.xlane.f32.xlu1 %v492_v14  ;;  %3072 = vpush %v300_v13  ;;  %v1133_v57 = vsel %vm141_vm0, %v204_v56, 0  ;;  %v3530_v13 = vpop.eup %3151  ;;  %v384_v14 = vadd.f32 %v383_v2, %v3460_v41  ;;  %v1296_v56 = vld [vmem:[#allocation14 + $0x28] sm:$0xff] }
 0x157   :  { %v515_v18 = vsel %vm379_vm2, %v514_v15, 0.0  ;;  %3074 = vpush %v312_v17  ;;  %1181 = vmatpush.msrb.mxu3 %v1180_v49  ;;  %v3519_v59 = vand.u32 4294901760, %v1133_v57  ;;  %v419_v21 = vadd.f32 %v418_v11, %v417_v3  ;;  %v427_v22 = vmul.f32 240.0, %v3530_v13 }
 0x158   :  { %516 = vadd.xlane.f32.xlu0 %v515_v18  ;;  %v395_v18 = vadd.f32 %v394_v5, %v3474_v48  ;;  %v408_v48 = vrot.slane %v407_v19, 2  ;;  %vm431_vm12 = vweird.f32 %v3530_v13 }
 0x159   :  { %1187 = vmatpush.msrb.mxu3 %v1186_v52  ;;  %v3524_v63 = vsub.f32 %v1133_v57, %v3519_v59  ;;  %v420_v28 = vrot.slane %v419_v21, 2  ;;  %v428_v29 = vsub.f32 1.0, %v427_v22  ;;  %v1314_v57 = vand.u32 4294901760, %v1296_v56 }
 0x15a   :  { %v396_v26 = vrot.slane %v395_v18, 2  ;;  %v409_v36 = vadd.f32 %v408_v48, %v407_v19 }
 0x15b   :  { %v1155_v17 = vand.u32 4294901760, %v3524_v63  ;;  %v421_v37 = vadd.f32 %v420_v28, %v419_v21 }
 0x15c   :  { %v397_v34 = vadd.f32 %v396_v26, %v395_v18 }
 0x15d   :  { %v1156_v24 = vsub.f32 %v3524_v63, %v1155_v17  ;;  %v422_v49 = vrot.slane %v421_v37, 1 }
 0x15f   :  { %v1157_v32 = vand.u32 4294901760, %v1156_v24  ;;  %v423_v53 = vadd.f32 %v422_v49, %v421_v37 }
 0x160   :  { %528 = vadd.xlane.f32.xlu0 %v527_v20 }
 0x16f   :  { %587 = vrot.lane.b32.xlu1 %v585_v23, %s3310_s1  ;;  %v385_v23 = vrot.slane %v384_v14, 2 }
 0x171   :  { %v386_v33 = vadd.f32 %v385_v23, %v384_v14 }
 0x174   :  { %597 = vrot.lane.b32.xlu0 %v595_v30, %s3310_s1 }
 0x186   :  { %s3071_s11 = spop %3070 }
 0x187   :  { %s273_s12 = smul.f32 %s3071_s11, %s3015_s29  ;;  %s3073_s13 = spop %3072 }
 0x188   :  { %s3514_s14 = smul.f32 %s3073_s13, %s3444_s0  ;;  %s3075_s15 = spop %3074 }
 0x189   :  { %s274_s2 = smul.f32 %s273_s12, %s3464_s20  ;;  %v276_v58 = vstv %s273_s12  ;;  %s3021_s20 = sld [smem:[#allocation10 + $0x2]]  ;;  %v505_v19 = vpop.xlane.xlu2 %504 }
 0x18a   :  { %s333_s16 = smul.f32 %s3514_s14, %s3514_s14  ;;  %v277_v16 = vmul.f32 %v276_v58, %v3398_v12  ;;  %v1295_v58 = vld [vmem:[#allocation14 + $0x20] sm:$0xff] }
 0x18b   :  { %s275_s17 = ssub.f32 %s3016_s30, %s274_s2  ;;  %s332_s18 = smul.f32 %s3075_s15, %s3444_s0 }
 0x18c   :  { %s3020_s0 = sld [smem:[#allocation9 + $0x2]] }
 0x18d   :  { %v278_v60 = vstv %s275_s17  ;;  %s334_s19 = ssub.f32 %s332_s18, %s333_s16 }
 0x18e   :  { %v279_v62 = vadd.f32 %v278_v60, %v277_v16  ;;  %v1342_v16 = vsub.f32 %v1296_v56, %v1314_v57  ;;  %v1316_v60 = vand.u32 4294901760, %v1295_v58  ;;  %s3038_s2 = sld [smem:[#allocation3 + $0x5]] }
 0x18f   :  { %s335_s3 = sadd.f32 1e-05, %s334_s19 }
 0x190   :  { %v971_v6 = vsel %vm141_vm0, %v279_v62, 0  ;;  %v1343_v61 = vand.u32 4294901760, %v1342_v16  ;;  %v1348_v62 = vsub.f32 %v1295_v58, %v1316_v60  ;;  %s3040_s16 = sld [smem:[#allocation3 + $0x7]] }
 0x191   :  { %v336_v10 = vstv %s335_s3  ;;  %v991_v12 = vand.u32 4294901760, %v971_v6  ;;  %s3025_s17 = sld [smem:[#allocation9 + $0x80]] }
 0x192   :  { %3153 = vrsqrt.f32 %v336_v10  ;;  %vm343_vm10 = vweird.f32 %v336_v10  ;;  %v1344_v2 = vsub.f32 %v1342_v16, %v1343_v61  ;;  %v1349_v3 = vand.u32 4294901760, %v1348_v62  ;;  %s3026_s18 = sld [smem:[#allocation10 + $0x80]] }
 0x193   :  { %1027 = vmatmul.f32.vlgmr.msra.gmra.mxu1 %v991_v12  ;;  %v992_v15 = vsub.f32 %v971_v6, %v991_v12 }
 0x194   :  { %1234 = vmatpush.msra.mxu1 %v3494_v38  ;;  %v1350_v5 = vsub.f32 %v1348_v62, %v1349_v3 }
 0x195   :  { %1053 = vmatmul.f32.vlgmr.msra.gmra.mxu2 %v992_v15  ;;  %v993_v20 = vand.u32 4294901760, %v992_v15 }
 0x196   :  { %1236 = vmatpush.msra.mxu1 %v3497_v40  ;;  %1261 = vmatpush.msra.mxu2 %v1178_v43  ;;  %v398_v43 = vrot.slane %v397_v34, 1 }
 0x197   :  { %1078 = vmatmul.f32.vlgmr.msra.gmra.mxu3 %v993_v20  ;;  %v994_v41 = vsub.f32 %v992_v15, %v993_v20  ;;  %v592_v20 = vstv %s3554_s24 }
 0x198   :  { %v3154_v25 = vpop.eup %3153  ;;  %1265 = vmatpush.msra.mxu2 %v1184_v47  ;;  %1286 = vmatpush.msra.mxu3 %v3494_v38  ;;  %v429_v38 = vmul.f32 %v3530_v13, %v428_v29  ;;  %v410_v47 = vrot.slane %v409_v36, 1 }
 0x199   :  { %v338_v54 = vmul.f32 %v3154_v25, %v336_v10  ;;  %v995_v27 = vand.u32 4294901760, %v994_v41  ;;  %vm344_vm9 = vweird.f32 %v3154_v25 }
 0x19a   :  { %1288 = vmatpush.msra.mxu3 %v3497_v40  ;;  %v387_v40 = vrot.slane %v386_v33, 1  ;;  %vm345_vm11 = vmor %vm343_vm10, %vm344_vm9  ;;  %v411_v52 = vadd.f32 %v410_v47, %v409_v36 }
 0x19b   :  { %v339_v30 = vmul.f32 %v3154_v25, %v338_v54  ;;  %996 = vmatmul.f32.vlgmr.msra.gmra.mxu0 %v995_v27  ;;  %1128 = vmatmul.f32.vlgmr.msrb.gmra.mxu1 %v991_v12 }
 0x19c   :  { %1209 = vmatpush.msra.mxu0 %v3500_v42  ;;  %v430_v42 = vadd.f32 %v3530_v13, %v429_v38  ;;  %v388_v51 = vadd.f32 %v387_v40, %v386_v33 }
 0x19d   :  { %1158 = vmatmul.f32.vlgmr.msrb.gmra.mxu2 %v1157_v32  ;;  %v340_v35 = vmul.f32 0.5, %v339_v30 }
 0x19e   :  { %1212 = vmatpush.msra.mxu0 %v3506_v44  ;;  %v399_v44 = vadd.f32 %v398_v43, %v397_v34  ;;  %v432_v55 = vsel %vm431_vm12, %v3530_v13, %v430_v42  ;;  %1374 = vmatpush.msrb.mxu2 %v1342_v16 }
 0x19f   :  { %1189 = vmatmul.f32.vlgmr.msrb.gmra.mxu3 %v3519_v59  ;;  %v341_v39 = vsub.f32 1.5, %v340_v35 }
 0x1a0   :  { %1399 = vmatpush.msrb.mxu3 %v1314_v57  ;;  %1377 = vmatpush.msrb.mxu2 %v1348_v62 }
 0x1a1   :  { %v342_v45 = vmul.f32 %v3154_v25, %v341_v39 }
 0x1a2   :  { %1401 = vmatpush.msrb.mxu3 %v1316_v60 }
 0x1a3   :  { %v346_v50 = vsel %vm345_vm11, %v3154_v25, %v342_v45  ;;  %1105 = vmatmul.f32.vlgmr.msrb.gmra.mxu0 %v991_v12  ;;  %1240 = vmatmul.f32.vlgmr.msra.gmra.mxu1 %v1155_v17  ;;  %v581_v12 = vstv %s3552_s5  ;;  %v506_v25 = vrot.slane %v505_v19, 4 }
 0x1a4   :  { %3076 = vpush %v346_v50  ;;  %1315 = vmatpush.msrb.mxu0 %v1314_v57  ;;  %v582_v17 = vmul.f32 %v581_v12, %v3390_v0  ;;  %v594_v24 = vmul.f32 %v581_v12, %v3392_v1 }
 0x1a5   :  { %3078 = vpush %v388_v51  ;;  %1267 = vmatmul.f32.vlgmr.msra.gmra.mxu2 %v3519_v59  ;;  %v507_v36 = vadd.f32 %v506_v25, %v505_v19 }
 0x1a6   :  { %3080 = vpush %v399_v44  ;;  %1317 = vmatpush.msrb.mxu0 %v1316_v60 }
 0x1a7   :  { %3082 = vpush %v411_v52  ;;  %1290 = vmatmul.f32.vlgmr.msra.gmra.mxu3 %v3519_v59  ;;  %v1345_v59 = vand.u32 4294901760, %v1344_v2  ;;  %v508_v42 = vrot.slane %v507_v36, 2 }
 0x1a8   :  { %3084 = vpush %v423_v53 }
 0x1a9   :  { %3086 = vpush %v432_v55  ;;  %1346 = vmatpush.msrb.mxu1 %v1345_v59 }
 0x1ab   :  { %1215 = vmatmul.f32.vlgmr.msra.gmra.mxu0 %v3524_v63  ;;  %v1351_v63 = vand.u32 4294901760, %v1350_v5 }
 0x1ac   :  { %1426 = vmatpush.msra.mxu0 %v1343_v61 }
 0x1ad   :  { %1352 = vmatpush.msrb.mxu1 %v1351_v63 }
 0x1ae   :  { %1430 = vmatpush.msra.mxu0 %v1349_v3 }
 0x1af   :  { %1451 = vmatpush.msra.mxu1 %v1314_v57  ;;  %v509_v57 = vadd.f32 %v508_v42, %v507_v36 }
 0x1b1   :  { %1453 = vmatpush.msra.mxu1 %v1316_v60  ;;  %v510_v2 = vrot.slane %v509_v57, 1 }
 0x1c9   :  { %v494_v8 = vpop.xlane.xlu1 %493 }
 0x1ca   :  { %v495_v23 = vrot.slane %v494_v8, 4 }
 0x1cb   :  { %v517_v6 = vpop.xlane.xlu0 %516 }
 0x1cc   :  { %v518_v48 = vrot.slane %v517_v6, 4  ;;  %v496_v33 = vadd.f32 %v495_v23, %v494_v8  ;;  %v511_v8 = vadd.f32 %v510_v2, %v509_v57 }
 0x1ce   :  { %v519_v38 = vadd.f32 %v518_v48, %v517_v6  ;;  %v497_v45 = vrot.slane %v496_v33, 2 }
 0x1d0   :  { %v520_v51 = vrot.slane %v519_v38, 2  ;;  %v498_v56 = vadd.f32 %v497_v45, %v496_v33 }
 0x1d2   :  { %v521_v16 = vadd.f32 %v520_v51, %v519_v38  ;;  %v499_v62 = vrot.slane %v498_v56, 1 }
 0x1d3   :  { %v529_v15 = vpop.xlane.xlu0 %528 }
 0x1d4   :  { %v530_v28 = vrot.slane %v529_v15, 4  ;;  %v522_v59 = vrot.slane %v521_v16, 1  ;;  %v500_v6 = vadd.f32 %v499_v62, %v498_v56 }
 0x1d5   :  { %s3077_s7 = spop %3076 }
 0x1d6   :  { %s348_s21 = smul.f32 %s3077_s7, %s3020_s0  ;;  %s3079_s22 = spop %3078  ;;  %v531_v43 = vadd.f32 %v530_v28, %v529_v15  ;;  %v1632_v28 = vld [vmem:[#allocation14 + $0x48] sm:$0xff] }
 0x1d7   :  { %s3081_s23 = spop %3080 }
 0x1d8   :  { %s349_s25 = smul.f32 %s348_s21, %s3514_s14  ;;  %v351_v10 = vstv %s348_s21  ;;  %s401_s26 = sadd.f32 %s3081_s23, %s3079_s22  ;;  %v532_v53 = vrot.slane %v531_v43, 2 }
 0x1d9   :  { %s3083_s27 = spop %3082  ;;  %v352_v11 = vmul.f32 %v351_v10, %v3418_v31  ;;  %v523_v10 = vadd.f32 %v522_v59, %v521_v16 }
 0x1da   :  { %s350_s6 = ssub.f32 %s3021_s20, %s349_s25  ;;  %s3085_s28 = spop %3084  ;;  %v533_v60 = vadd.f32 %v532_v53, %v531_v43 }
 0x1db   :  { %s425_s29 = sadd.f32 %s3085_s28, %s3083_s27  ;;  %s3559_s30 = spop %3086 }
 0x1dc   :  { %v353_v13 = vstv %s350_s6  ;;  %s3562_s11 = smul.f32 %s3559_s30, %s401_s26  ;;  %v534_v5 = vrot.slane %v533_v60, 1 }
 0x1dd   :  { %v354_v14 = vadd.f32 %v353_v13, %v352_v11  ;;  %s443_s12 = smul.f32 %s3559_s30, %s425_s29  ;;  %v696_v11 = vstv %s3038_s2  ;;  %s3626_s29 = sld [smem:[#allocation3 + $0x4]] }
 0x1de   :  { %s444_s13 = smul.f32 %s3562_s11, %s3562_s11  ;;  %v535_v12 = vadd.f32 %v534_v5, %v533_v60  ;;  %v697_v13 = vmul.f32 %v696_v11, %v3390_v0 }
 0x1df   :  { %v1298_v18 = vsel %vm141_vm0, %v354_v14, 0  ;;  %v708_v14 = vstv %s3040_s16  ;;  %vm1466_vm0 = vcmask 1046528  }
 0x1e0   :  { %v1318_v31 = vand.u32 4294901760, %v1298_v18  ;;  %s445_s14 = ssub.f32 %s443_s12, %s444_s13  ;;  %v709_v15 = vmul.f32 %v708_v14, %v3392_v1 }
 0x1e1   :  { %v588_v21 = vpop.permute.xlu1 %587  ;;  %s3637_s12 = sld [smem:[#allocation7 + $0x100]] }
 0x1e2   :  { %v590_v22 = vadd.f32 %v588_v21, %v582_v17  ;;  %1354 = vmatmul.f32.vlgmr.msrb.gmra.mxu1 %v1318_v31  ;;  %v1319_v41 = vsub.f32 %v1298_v18, %v1318_v31  ;;  %s446_s15 = sadd.f32 1e-05, %s445_s14  ;;  %v1462_v17 = vld [vmem:[#allocation14 + $0x38] sm:$0xff] }
 0x1e3   :  { %v1468_v18 = vsel %vm1466_vm0, %v1462_v17, 0  ;;  %s3045_s13 = sld [smem:[#allocation3 + $0x85]] }
 0x1e4   :  { %v3571_v26 = vadd.f32 %v592_v20, %v590_v22  ;;  %1380 = vmatmul.f32.vlgmr.msrb.gmra.mxu2 %v1319_v41  ;;  %v1320_v54 = vand.u32 4294901760, %v1319_v41  ;;  %v447_v27 = vstv %s446_s15  ;;  %v1484_v19 = vand.u32 4294901760, %v1468_v18  ;;  %s3030_s14 = sld [smem:[#allocation9 + $0x81]] }
 0x1e5   :  { %3155 = vrsqrt.f32 %v447_v27  ;;  %vm454_vm14 = vweird.f32 %v447_v27  ;;  %s3031_s15 = sld [smem:[#allocation10 + $0x81]] }
 0x1e6   :  { %v598_v29 = vpop.permute.xlu0 %597  ;;  %v604_v30 = vsel %vm379_vm2, %v3571_v26, 0.0  ;;  %v626_v32 = vmul.f32 %v3571_v26, %v3571_v26  ;;  %1405 = vmatmul.f32.vlgmr.msrb.gmra.mxu3 %v1320_v54  ;;  %v1321_v34 = vsub.f32 %v1319_v41, %v1320_v54  ;;  %1569 = vmatpush.msrb.mxu1 %v1484_v19 }
 0x1e7   :  { %v600_v35 = vadd.f32 %v598_v29, %v594_v24  ;;  %605 = vadd.xlane.f32.xlu2 %v604_v30  ;;  %1485 = vmatpush.msra.mxu2 %v1484_v19  ;;  %v1637_v30 = vsel %vm1466_vm0, %v1632_v28, 0 }
 0x1e8   :  { %v627_v37 = vsel %vm379_vm2, %v626_v32, 0.0  ;;  %v1322_v39 = vand.u32 4294901760, %v1321_v34  ;;  %v3591_v33 = vand.u32 4294901760, %v1637_v30 }
 0x1e9   :  { %v3578_v40 = vadd.f32 %v600_v35, %v592_v20  ;;  %628 = vadd.xlane.f32.xlu0 %v627_v37  ;;  %v1512_v20 = vsub.f32 %v1468_v18, %v1484_v19  ;;  %v1631_v35 = vld [vmem:[#allocation14 + $0x40] sm:$0xff] }
 0x1ea   :  { %1323 = vmatmul.f32.vlgmr.msrb.gmra.mxu0 %v1322_v39  ;;  %1455 = vmatmul.f32.vlgmr.msra.gmra.mxu1 %v1318_v31  ;;  %v3595_v36 = vsub.f32 %v1637_v30, %v3591_v33  ;;  %v3597_v37 = vand.u32 4294901760, %v1631_v35  ;;  %v1801_v30 = vld [vmem:[#allocation14 + $0x58] sm:$0xff] }
 0x1eb   :  { %v638_v47 = vmul.f32 %v3578_v40, %v3578_v40  ;;  %v3156_v49 = vpop.eup %3155  ;;  %v615_v50 = vsel %vm379_vm2, %v3578_v40, 0.0  ;;  %v1513_v22 = vand.u32 4294901760, %v1512_v20  ;;  %1544 = vmatpush.msrb.mxu0 %v1512_v20 }
 0x1ec   :  { %v449_v52 = vmul.f32 %v3156_v49, %v447_v27  ;;  %vm455_vm13 = vweird.f32 %v3156_v49  ;;  %v1682_v39 = vand.u32 4294901760, %v3595_v36  ;;  %v3602_v43 = vsub.f32 %v1631_v35, %v3597_v37 }
 0x1ed   :  { %v639_v44 = vsel %vm379_vm2, %v638_v47, 0.0  ;;  %vm456_vm15 = vmor %vm454_vm14, %vm455_vm13  ;;  %v1514_v0 = vsub.f32 %v1512_v20, %v1513_v22 }
 0x1ee   :  { %640 = vadd.xlane.f32.xlu1 %v639_v44  ;;  %v450_v55 = vmul.f32 %v3156_v49, %v449_v52  ;;  %v1688_v42 = vand.u32 4294901760, %v3602_v43 }
 0x1ef   :  { %616 = vadd.xlane.f32.xlu2 %v615_v50  ;;  %v1515_v24 = vand.u32 4294901760, %v1514_v0 }
 0x1f0   :  { %v451_v58 = vmul.f32 0.5, %v450_v55  ;;  %v1689_v52 = vsub.f32 %v3602_v43, %v1688_v42 }
 0x1f1   :  { %1516 = vmatpush.msra.mxu3 %v1515_v24 }
 0x1f2   :  { %1432 = vmatmul.f32.vlgmr.msra.gmra.mxu0 %v1318_v31  ;;  %v452_v61 = vsub.f32 1.5, %v451_v58  ;;  %v1461_v31 = vld [vmem:[#allocation14 + $0x30] sm:$0xff]  ;;  %v1690_v56 = vand.u32 4294901760, %v1689_v52 }
 0x1f3   :  { %v1486_v21 = vand.u32 4294901760, %v1461_v31 }
 0x1f4   :  { %v453_v3 = vmul.f32 %v3156_v49, %v452_v61 }
 0x1f5   :  { %v1518_v23 = vsub.f32 %v1461_v31, %v1486_v21  ;;  %1571 = vmatpush.msrb.mxu1 %v1486_v21  ;;  %1487 = vmatpush.msra.mxu2 %v1486_v21 }
 0x1f6   :  { %v457_v63 = vsel %vm456_vm15, %v3156_v49, %v453_v3  ;;  %v1683_v49 = vsub.f32 %v3595_v36, %v1682_v39 }
 0x1f7   :  { %3088 = vpush %v457_v63  ;;  %v1519_v41 = vand.u32 4294901760, %v1518_v23  ;;  %1547 = vmatpush.msrb.mxu0 %v1518_v23  ;;  %1596 = vmatpush.msrb.mxu2 %v1513_v22 }
 0x1f8   :  { %3090 = vpush %v500_v6  ;;  %v1684_v44 = vand.u32 4294901760, %v1683_v49 }
 0x1f9   :  { %3092 = vpush %v511_v8  ;;  %v1520_v25 = vsub.f32 %v1518_v23, %v1519_v41  ;;  %1600 = vmatpush.msrb.mxu2 %v1519_v41  ;;  %1654 = vmatpush.msra.mxu0 %v3591_v33 }
 0x1fa   :  { %3094 = vpush %v523_v10  ;;  %1685 = vmatpush.msra.mxu1 %v1684_v44 }
 0x1fb   :  { %3096 = vpush %v535_v12  ;;  %v1521_v27 = vand.u32 4294901760, %v1520_v25  ;;  %1656 = vmatpush.msra.mxu0 %v3597_v37 }
 0x1fc   :  { %1691 = vmatpush.msra.mxu1 %v1690_v56 }
 0x1fd   :  { %1522 = vmatpush.msra.mxu3 %v1521_v27 }
 0x1ff   :  { %1621 = vmatpush.msrb.mxu3 %v1484_v19 }
 0x201   :  { %1623 = vmatpush.msrb.mxu3 %v1486_v21 }
 0x207   :  { %699 = vrot.lane.b32.xlu2 %v697_v13, %s3310_s1 }
 0x20f   :  { %711 = vrot.lane.b32.xlu2 %v709_v15, %s3310_s1 }
 0x210   :  { %v1028_v1 = vpop.f32.mrf.mxu1 }
 0x218   :  { %v997_v48 = vpop.f32.mrf.mxu0  ;;  %v1054_v54 = vpop.f32.mrf.mxu2 }
 0x219   :  { %v1029_v29 = vadd.f32 %v1028_v1, %v997_v48  ;;  %v1129_v45 = vpop.f32.mrf.mxu1 }
 0x21a   :  { %v1079_v32 = vpop.f32.mrf.mxu3 }
 0x21b   :  { %v1055_v34 = vadd.f32 %v1054_v54, %v1029_v29 }
 0x21d   :  { %v1080_v38 = vadd.f32 %v1079_v32, %v1055_v34  ;;  %v1806_v34 = vsel %vm1466_vm0, %v1801_v30, 0 }
 0x21e   :  { %v1822_v35 = vand.u32 4294901760, %v1806_v34 }
 0x220   :  { %v1106_v47 = vpop.f32.mrf.mxu0  ;;  %v1159_v51 = vpop.f32.mrf.mxu2 }
 0x221   :  { %v1107_v50 = vadd.f32 %v1106_v47, %v1080_v38  ;;  %v1241_v61 = vpop.f32.mrf.mxu1  ;;  %v1800_v38 = vld [vmem:[#allocation14 + $0x50] sm:$0xff] }
 0x222   :  { %v1190_v55 = vpop.f32.mrf.mxu3 }
 0x223   :  { %v1130_v53 = vadd.f32 %v1129_v45, %v1107_v50 }
 0x225   :  { %v1160_v57 = vadd.f32 %v1159_v51, %v1130_v53 }
 0x227   :  { %v1191_v58 = vadd.f32 %v1190_v55, %v1160_v57 }
 0x228   :  { %s3089_s19 = spop %3088  ;;  %v1216_v16 = vpop.f32.mrf.mxu0  ;;  %v1268_v3 = vpop.f32.mrf.mxu2 }
 0x229   :  { %s459_s3 = smul.f32 %s3089_s19, %s3025_s17  ;;  %s3091_s0 = spop %3090  ;;  %v1217_v60 = vadd.f32 %v1216_v16, %v1191_v58 }
 0x22a   :  { %s3093_s20 = spop %3092  ;;  %v1291_v6 = vpop.f32.mrf.mxu3 }
 0x22b   :  { %s460_s5 = smul.f32 %s459_s3, %s3562_s11  ;;  %v462_v62 = vstv %s459_s3  ;;  %s513_s7 = sadd.f32 %s3093_s20, %s3091_s0  ;;  %v1242_v2 = vadd.f32 %v1241_v61, %v1217_v60  ;;  %v693_v60 = vstv %s3626_s29 }
 0x22c   :  { %s3095_s21 = spop %3094  ;;  %v463_v5 = vmul.f32 %v462_v62, %v3427_v4  ;;  %v466_v63 = vmul.f32 %v462_v62, %v3430_v7  ;;  %s3629_s11 = sld [smem:[#allocation3 + $0x6]] }
 0x22d   :  { %s461_s22 = ssub.f32 %s3026_s18, %s460_s5  ;;  %s3609_s23 = smul.f32 %s3559_s30, %s513_s7  ;;  %v1269_v59 = vadd.f32 %v1268_v3, %v1242_v2 }
 0x22e   :  { %s3097_s24 = spop %3096  ;;  %s3047_s18 = sld [smem:[#allocation3 + $0x87]] }
 0x22f   :  { %v464_v8 = vstv %s461_s22  ;;  %s556_s25 = smul.f32 %s3609_s23, %s3609_s23  ;;  %s537_s26 = sadd.f32 %s3097_s24, %s3095_s21  ;;  %v3615_v10 = vadd.f32 %v1291_v6, %v1269_v59 }
 0x230   :  { %v465_v12 = vadd.f32 %v464_v8, %v463_v5  ;;  %v467_v11 = vadd.f32 %v466_v63, %v464_v8  ;;  %s3713_s29 = sld [smem:[#allocation3 + $0x86]] }
 0x231   :  { %s555_s27 = smul.f32 %s3559_s30, %s537_s26 }
 0x232   :  { %v1464_v13 = vsel %vm379_vm2, %v465_v12, 0  ;;  %v1634_v14 = vsel %vm379_vm2, %v467_v11, 0  ;;  %v1970_v12 = vld [vmem:[#allocation14 + $0x68] sm:$0xff] }
 0x233   :  { %v1657_v15 = vand.u32 4294901760, %v1634_v14  ;;  %s557_s6 = ssub.f32 %s555_s27, %s556_s25  ;;  %v1488_v4 = vand.u32 4294901760, %v1464_v13 }
 0x234   :  { %s3052_s27 = sld [smem:[#allocation3 + $0x105]] }
 0x235   :  { %v1658_v17 = vsub.f32 %v1634_v14, %v1657_v15  ;;  %s558_s28 = sadd.f32 1e-05, %s557_s6  ;;  %1524 = vmatmul.f32.vlgmr.msra.gmra.mxu3 %v1488_v4  ;;  %v1489_v7 = vsub.f32 %v1464_v13, %v1488_v4  ;;  %v3632_v13 = vld [vmem:[#allocation11] sm:$0xff] }
 0x236   :  { %1738 = vmatpush.msra.mxu3 %v3591_v33  ;;  %v694_v14 = vmul.f32 %v3632_v13, %v693_v60  ;;  %s3054_s6 = sld [smem:[#allocation3 + $0x107]] }
 0x237   :  { %v559_v18 = vstv %s558_s28  ;;  %1550 = vmatmul.f32.vlgmr.msrb.gmra.mxu0 %v1489_v7  ;;  %v1490_v19 = vand.u32 4294901760, %v1489_v7  ;;  %v1659_v31 = vand.u32 4294901760, %v1658_v17  ;;  %s3036_s28 = sld [smem:[#allocation10 + $0x82]] }
 0x238   :  { %3157 = vrsqrt.f32 %v559_v18  ;;  %1740 = vmatpush.msra.mxu3 %v3597_v37  ;;  %1765 = vmatpush.msrb.mxu0 %v1682_v39  ;;  %vm566_vm3 = vweird.f32 %v559_v18  ;;  %v1850_v39 = vsub.f32 %v1806_v34, %v1822_v35 }
 0x239   :  { %1575 = vmatmul.f32.vlgmr.msrb.gmra.mxu1 %v1490_v19  ;;  %v1491_v20 = vsub.f32 %v1489_v7, %v1490_v19  ;;  %v1660_v21 = vsub.f32 %v1658_v17, %v1659_v31 }
 0x23a   :  { %1769 = vmatpush.msrb.mxu0 %v1688_v42  ;;  %1790 = vmatpush.msrb.mxu1 %v3591_v33  ;;  %v1851_v51 = vand.u32 4294901760, %v1850_v39 }
 0x23b   :  { %v1492_v22 = vand.u32 4294901760, %v1491_v20  ;;  %v1661_v23 = vand.u32 4294901760, %v1660_v21 }
 0x23c   :  { %1792 = vmatpush.msrb.mxu1 %v3597_v37  ;;  %v1852_v56 = vsub.f32 %v1850_v39, %v1851_v51 }
 0x23d   :  { %1493 = vmatmul.f32.vlgmr.msra.gmra.mxu2 %v1492_v22  ;;  %1625 = vmatmul.f32.vlgmr.msrb.gmra.mxu3 %v1488_v4 }
 0x23e   :  { %v3158_v0 = vpop.eup %3157  ;;  %1713 = vmatpush.msra.mxu2 %v3595_v36  ;;  %v1853_v2 = vand.u32 4294901760, %v1852_v56 }
 0x23f   :  { %v561_v41 = vmul.f32 %v3158_v0, %v559_v18  ;;  %1662 = vmatmul.f32.vlgmr.msra.gmra.mxu0 %v1661_v23  ;;  %vm567_vm1 = vweird.f32 %v3158_v0  ;;  %v1969_v23 = vld [vmem:[#allocation14 + $0x60] sm:$0xff] }
 0x240   :  { %1716 = vmatpush.msra.mxu2 %v3602_v43  ;;  %vm568_vm4 = vmor %vm566_vm3, %vm567_vm1  ;;  %v1824_v43 = vand.u32 4294901760, %v1800_v38  ;;  %1882 = vmatpush.msra.mxu0 %v1850_v39  ;;  %v716_v39 = vstv %s3637_s12 }
 0x241   :  { %1693 = vmatmul.f32.vlgmr.msra.gmra.mxu1 %v1657_v15  ;;  %v562_v1 = vmul.f32 %v3158_v0, %v561_v41  ;;  %1854 = vmatpush.msrb.mxu3 %v1853_v2  ;;  %v3645_v41 = vand.u32 4294901760, %v1969_v23 }
 0x242   :  { %1907 = vmatpush.msra.mxu1 %v1822_v35  ;;  %v1856_v44 = vsub.f32 %v1800_v38, %v1824_v43 }
 0x243   :  { %v563_v24 = vmul.f32 0.5, %v562_v1  ;;  %v3653_v30 = vsub.f32 %v1969_v23, %v3645_v41 }
 0x244   :  { %1909 = vmatpush.msra.mxu1 %v1824_v43  ;;  %v1857_v57 = vand.u32 4294901760, %v1856_v44  ;;  %1885 = vmatpush.msra.mxu0 %v1856_v44 }
 0x245   :  { %1602 = vmatmul.f32.vlgmr.msrb.gmra.mxu2 %v1488_v4  ;;  %1744 = vmatmul.f32.vlgmr.msra.gmra.mxu3 %v1659_v31  ;;  %v564_v25 = vsub.f32 1.5, %v563_v24  ;;  %v1975_v4 = vsel %vm1466_vm0, %v1970_v12, 0  ;;  %v704_v31 = vstv %s3629_s11 }
 0x246   :  { %1823 = vmatpush.msrb.mxu2 %v1822_v35  ;;  %v1858_v3 = vsub.f32 %v1856_v44, %v1857_v57  ;;  %v3639_v20 = vand.u32 4294901760, %v1975_v4 }
 0x247   :  { %v565_v48 = vmul.f32 %v3158_v0, %v564_v25  ;;  %1771 = vmatmul.f32.vlgmr.msrb.gmra.mxu0 %v1657_v15 }
 0x248   :  { %1825 = vmatpush.msrb.mxu2 %v1824_v43  ;;  %v1859_v8 = vand.u32 4294901760, %v1858_v3  ;;  %1992 = vmatpush.msrb.mxu0 %v3639_v20 }
 0x249   :  { %v569_v54 = vsel %vm568_vm4, %v3158_v0, %v565_v48  ;;  %1794 = vmatmul.f32.vlgmr.msrb.gmra.mxu1 %v1657_v15  ;;  %v3643_v0 = vsub.f32 %v1975_v4, %v3639_v20  ;;  %v3647_v48 = vld [vmem:[#allocation12] sm:$0xff] }
 0x24a   :  { %3098 = vpush %v569_v54  ;;  %1860 = vmatpush.msrb.mxu3 %v1859_v8  ;;  %v705_v54 = vmul.f32 %v3647_v48, %v704_v31  ;;  %1994 = vmatpush.msrb.mxu0 %v3645_v41 }
 0x24c   :  { %1959 = vmatpush.msra.mxu3 %v1822_v35  ;;  %v2026_v35 = vand.u32 4294901760, %v3653_v30 }
 0x24d   :  { %1719 = vmatmul.f32.vlgmr.msra.gmra.mxu2 %v1658_v17 }
 0x24e   :  { %1934 = vmatpush.msra.mxu2 %v1851_v51  ;;  %1961 = vmatpush.msra.mxu3 %v1824_v43 }
 0x250   :  { %1938 = vmatpush.msra.mxu2 %v1857_v57 }
 0x25a   :  { %v606_v27 = vpop.xlane.xlu2 %605 }
 0x25b   :  { %v607_v28 = vrot.slane %v606_v27, 4 }
 0x25c   :  { %v629_v29 = vpop.xlane.xlu0 %628 }
 0x25d   :  { %v608_v32 = vadd.f32 %v607_v28, %v606_v27  ;;  %v630_v33 = vrot.slane %v629_v29, 4 }
 0x25f   :  { %v609_v36 = vrot.slane %v608_v32, 2  ;;  %v631_v37 = vadd.f32 %v630_v33, %v629_v29  ;;  %v1355_v5 = vpop.f32.mrf.mxu1  ;;  %v2020_v29 = vand.u32 4294901760, %v3643_v0 }
 0x261   :  { %v641_v45 = vpop.xlane.xlu1 %640  ;;  %v610_v47 = vadd.f32 %v609_v36, %v608_v32  ;;  %v632_v49 = vrot.slane %v631_v37, 2  ;;  %v2021_v34 = vsub.f32 %v3643_v0, %v2020_v29 }
 0x262   :  { %v642_v42 = vrot.slane %v641_v45, 4  ;;  %v617_v50 = vpop.xlane.xlu2 %616 }
 0x263   :  { %v618_v52 = vrot.slane %v617_v50, 4  ;;  %v611_v53 = vrot.slane %v610_v47, 1  ;;  %v633_v62 = vadd.f32 %v632_v49, %v631_v37 }
 0x264   :  { %v643_v55 = vadd.f32 %v642_v42, %v641_v45  ;;  %v2022_v45 = vand.u32 4294901760, %v2021_v34 }
 0x265   :  { %v619_v58 = vadd.f32 %v618_v52, %v617_v50  ;;  %v612_v16 = vadd.f32 %v611_v53, %v610_v47  ;;  %v634_v18 = vrot.slane %v633_v62, 1  ;;  %v2027_v47 = vsub.f32 %v3653_v30, %v2026_v35 }
 0x266   :  { %v644_v61 = vrot.slane %v643_v55, 2  ;;  %2023 = vmatpush.msrb.mxu1 %v2022_v45  ;;  %v787_v52 = vstv %s3045_s13 }
 0x267   :  { %v620_v59 = vrot.slane %v619_v58, 2  ;;  %3100 = vpush %v612_v16  ;;  %v1324_v63 = vpop.f32.mrf.mxu0  ;;  %v1381_v17 = vpop.f32.mrf.mxu2  ;;  %v635_v28 = vadd.f32 %v634_v18, %v633_v62  ;;  %v2028_v50 = vand.u32 4294901760, %v2027_v47  ;;  %v788_v53 = vmul.f32 %v3632_v13, %v787_v52 }
 0x268   :  { %v645_v6 = vadd.f32 %v644_v61, %v643_v55  ;;  %v1356_v11 = vadd.f32 %v1355_v5, %v1324_v63  ;;  %v1456_v38 = vpop.f32.mrf.mxu1  ;;  %v799_v63 = vstv %s3047_s18 }
 0x269   :  { %v621_v15 = vadd.f32 %v620_v59, %v619_v58  ;;  %v1406_v27 = vpop.f32.mrf.mxu3  ;;  %2029 = vmatpush.msrb.mxu1 %v2028_v50  ;;  %790 = vrot.lane.b32.xlu1 %v788_v53, %s3310_s1 }
 0x26a   :  { %v700_v7 = vpop.permute.xlu2 %699  ;;  %v646_v19 = vrot.slane %v645_v6, 1  ;;  %v1382_v21 = vadd.f32 %v1381_v17, %v1356_v11 }
 0x26b   :  { %v622_v22 = vrot.slane %v621_v15, 1  ;;  %v702_v1 = vadd.f32 %v700_v7, %v694_v14 }
 0x26c   :  { %v647_v25 = vadd.f32 %v646_v19, %v645_v6  ;;  %v1407_v32 = vadd.f32 %v1406_v27, %v1382_v21 }
 0x26d   :  { %v623_v24 = vadd.f32 %v622_v22, %v621_v15  ;;  %v706_v37 = vadd.f32 %v705_v54, %v702_v1  ;;  %v878_v22 = vstv %s3052_s27  ;;  %v890_v1 = vstv %s3054_s6 }
 0x26e   :  { %v879_v23 = vmul.f32 %v3632_v13, %v878_v22 }
 0x26f   :  { %3102 = vpush %v623_v24  ;;  %v1433_v33 = vpop.f32.mrf.mxu0 }
 0x270   :  { %3104 = vpush %v635_v28  ;;  %v1434_v36 = vadd.f32 %v1433_v33, %v1407_v32  ;;  %v891_v28 = vmul.f32 %v3647_v48, %v890_v1 }
 0x271   :  { %3106 = vpush %v647_v25 }
 0x272   :  { %v712_v43 = vpop.permute.xlu2 %711  ;;  %v1457_v49 = vadd.f32 %v1456_v38, %v1434_v36 }
 0x273   :  { %v714_v42 = vadd.f32 %v712_v43, %v706_v37 }
 0x274   :  { %v3660_v51 = vadd.f32 %v1457_v49, %v3615_v10 }
 0x275   :  { %v3662_v44 = vadd.f32 %v716_v39, %v714_v42 }
 0x277   :  { %v720_v55 = vsel %vm379_vm2, %v3662_v44, 0.0  ;;  %v731_v56 = vmul.f32 %v3662_v44, %v3662_v44 }
 0x278   :  { %721 = vadd.xlane.f32.xlu2 %v720_v55 }
 0x279   :  { %v732_v10 = vsel %vm379_vm2, %v731_v56, 0.0  ;;  %v2139_v56 = vld [vmem:[#allocation14 + $0x78] sm:$0xff] }
 0x27a   :  { %733 = vadd.xlane.f32.xlu0 %v732_v10  ;;  %v2144_v10 = vsel %vm1466_vm0, %v2139_v56, 0 }
 0x27b   :  { %s3099_s2 = spop %3098 }
 0x27c   :  { %s571_s16 = smul.f32 %s3099_s2, %s3030_s14  ;;  %s3051_s2 = sld [smem:[#allocation3 + $0x104]] }
 0x27e   :  { %s572_s17 = smul.f32 %s571_s16, %s3609_s23  ;;  %v574_v57 = vstv %s571_s16  ;;  %s3053_s16 = sld [smem:[#allocation3 + $0x106]] }
 0x27f   :  { %v575_v58 = vmul.f32 %v574_v57, %v3479_v9  ;;  %v578_v16 = vmul.f32 %v574_v57, %v3469_v46  ;;  %v800_v46 = vmul.f32 %v3647_v48, %v799_v63  ;;  %v2160_v57 = vand.u32 4294901760, %v2144_v10 }
 0x280   :  { %s573_s19 = ssub.f32 %s3031_s15, %s572_s17 }
 0x281   :  { %s3048_s15 = sld [smem:[#allocation7 + $0x101]] }
 0x282   :  { %v576_v60 = vstv %s573_s19  ;;  %s3055_s17 = sld [smem:[#allocation7 + $0x102]] }
 0x283   :  { %v577_v61 = vadd.f32 %v576_v60, %v575_v58  ;;  %v579_v62 = vadd.f32 %v578_v16, %v576_v60  ;;  %v3313_v58 = vmov 120.0   ;;  %v2138_v16 = vld [vmem:[#allocation14 + $0x70] sm:$0xff]  ;;  %v2188_v60 = vsub.f32 %v2144_v10, %v2160_v57 }
 0x285   :  { %v1803_v2 = vsel %vm379_vm2, %v577_v61, 0  ;;  %v1972_v3 = vsel %vm379_vm2, %v579_v62, 0  ;;  %v2162_v61 = vand.u32 4294901760, %v2138_v16 }
 0x286   :  { %v1995_v59 = vand.u32 4294901760, %v1972_v3  ;;  %v1826_v5 = vand.u32 4294901760, %v1803_v2 }
 0x287   :  { %v2194_v62 = vsub.f32 %v2138_v16, %v2162_v61 }
 0x288   :  { %v1996_v6 = vsub.f32 %v1972_v3, %v1995_v59  ;;  %1862 = vmatmul.f32.vlgmr.msrb.gmra.mxu3 %v1826_v5  ;;  %v1827_v8 = vsub.f32 %v1803_v2, %v1826_v5 }
 0x289   :  { %2076 = vmatpush.msrb.mxu3 %v3639_v20  ;;  %v2195_v3 = vand.u32 4294901760, %v2194_v62 }
 0x28a   :  { %1888 = vmatmul.f32.vlgmr.msra.gmra.mxu0 %v1827_v8  ;;  %v1828_v12 = vand.u32 4294901760, %v1827_v8  ;;  %v1997_v9 = vand.u32 4294901760, %v1996_v6 }
 0x28b   :  { %2078 = vmatpush.msrb.mxu3 %v3645_v41  ;;  %2103 = vmatpush.msra.mxu0 %v2020_v29  ;;  %v2196_v63 = vsub.f32 %v2194_v62, %v2195_v3 }
 0x28c   :  { %1913 = vmatmul.f32.vlgmr.msra.gmra.mxu1 %v1828_v12  ;;  %v1829_v11 = vsub.f32 %v1827_v8, %v1828_v12  ;;  %v1998_v14 = vsub.f32 %v1996_v6, %v1997_v9  ;;  %v2308_v12 = vld [vmem:[#allocation14 + $0x88] sm:$0xff] }
 0x28d   :  { %2107 = vmatpush.msra.mxu0 %v2026_v35  ;;  %2128 = vmatpush.msra.mxu1 %v3639_v20  ;;  %v2197_v8 = vand.u32 4294901760, %v2196_v63 }
 0x28e   :  { %v1830_v15 = vand.u32 4294901760, %v1829_v11  ;;  %802 = vrot.lane.b32.xlu0 %v800_v46, %s3310_s1  ;;  %v1999_v4 = vand.u32 4294901760, %v1998_v14  ;;  %v2307_v14 = vld [vmem:[#allocation14 + $0x80] sm:$0xff] }
 0x28f   :  { %2130 = vmatpush.msra.mxu1 %v3645_v41 }
 0x290   :  { %1831 = vmatmul.f32.vlgmr.msrb.gmra.mxu2 %v1830_v15  ;;  %1963 = vmatmul.f32.vlgmr.msra.gmra.mxu3 %v1826_v5 }
 0x291   :  { %2051 = vmatpush.msrb.mxu2 %v3643_v0  ;;  %881 = vrot.lane.b32.xlu2 %v879_v23, %s3310_s1 }
 0x292   :  { %2000 = vmatmul.f32.vlgmr.msrb.gmra.mxu0 %v1999_v4 }
 0x293   :  { %2054 = vmatpush.msrb.mxu2 %v3653_v30  ;;  %2220 = vmatpush.msrb.mxu0 %v2188_v60 }
 0x294   :  { %2031 = vmatmul.f32.vlgmr.msrb.gmra.mxu1 %v1995_v59 }
 0x295   :  { %2245 = vmatpush.msrb.mxu1 %v2160_v57  ;;  %2223 = vmatpush.msrb.mxu0 %v2194_v62  ;;  %v807_v62 = vstv %s3048_s15 }
 0x297   :  { %2247 = vmatpush.msrb.mxu1 %v2162_v61 }
 0x298   :  { %1940 = vmatmul.f32.vlgmr.msra.gmra.mxu2 %v1826_v5  ;;  %2082 = vmatmul.f32.vlgmr.msrb.gmra.mxu3 %v1997_v9  ;;  %s3101_s3 = spop %3100  ;;  %v2313_v9 = vsel %vm1466_vm0, %v2308_v12, 0 }
 0x299   :  { %893 = vrot.lane.b32.xlu2 %v891_v28, %s3310_s1  ;;  %2161 = vmatpush.msra.mxu2 %v2160_v57  ;;  %s3035_s1 = sld [smem:[#allocation9 + $0x82]]  ;;  %v3704_v46 = vand.u32 4294901760, %v2313_v9 }
 0x29a   :  { %2109 = vmatmul.f32.vlgmr.msra.gmra.mxu0 %v1995_v59 }
 0x29b   :  { %2163 = vmatpush.msra.mxu2 %v2162_v61  ;;  %2330 = vmatpush.msra.mxu0 %v3704_v46 }
 0x29c   :  { %2132 = vmatmul.f32.vlgmr.msra.gmra.mxu1 %v1995_v59 }
 0x2a0   :  { %s3103_s0 = spop %3102  ;;  %2057 = vmatmul.f32.vlgmr.msrb.gmra.mxu2 %v1996_v6 }
 0x2a1   :  { %s625_s20 = sadd.f32 %s3103_s0, %s3101_s3  ;;  %s3105_s5 = spop %3104 }
 0x2a2   :  { %s3107_s7 = spop %3106 }
 0x2a3   :  { %s3685_s21 = smul.f32 %s3559_s30, %s625_s20  ;;  %s649_s22 = sadd.f32 %s3107_s7, %s3105_s5 }
 0x2a5   :  { %s668_s23 = smul.f32 %s3685_s21, %s3685_s21 }
 0x2a6   :  { %s667_s24 = smul.f32 %s3559_s30, %s649_s22  ;;  %s3702_s30 = sld [smem:[#allocation3 + $0x84]] }
 0x2a7   :  { %s3042_s22 = sld [smem:[#allocation9 + $0x100]] }
 0x2a8   :  { %s669_s25 = ssub.f32 %s667_s24, %s668_s23 }
 0x2a9   :  { %s3043_s23 = sld [smem:[#allocation10 + $0x100]] }
 0x2aa   :  { %s670_s26 = sadd.f32 1e-05, %s669_s25 }
 0x2ac   :  { %v671_v17 = vstv %s670_s26 }
 0x2ad   :  { %3159 = vrsqrt.f32 %v671_v17  ;;  %vm678_vm6 = vweird.f32 %v671_v17 }
 0x2ae   :  { %3161 = vrcp.f32 %v3313_v58 }
 0x2b3   :  { %v3160_v7 = vpop.eup %3159 }
 0x2b4   :  { %v673_v18 = vmul.f32 %v3160_v7, %v671_v17  ;;  %v1551_v19 = vpop.f32.mrf.mxu0  ;;  %vm679_vm5 = vweird.f32 %v3160_v7  ;;  %v3698_v59 = vpop.eup %3161  ;;  %v3708_v17 = vsub.f32 %v2313_v9, %v3704_v46 }
 0x2b5   :  { %vm680_vm7 = vmor %vm678_vm6, %vm679_vm5  ;;  %v744_v6 = vmul.f32 120.0, %v3698_v59  ;;  %vm748_vm8 = vweird.f32 %v3698_v59 }
 0x2b6   :  { %v674_v31 = vmul.f32 %v3160_v7, %v673_v18  ;;  %v1576_v20 = vpop.f32.mrf.mxu1  ;;  %v3710_v18 = vand.u32 4294901760, %v2307_v14 }
 0x2b7   :  { %v745_v4 = vsub.f32 1.0, %v744_v6 }
 0x2b8   :  { %v675_v21 = vmul.f32 0.5, %v674_v31  ;;  %v1525_v24 = vpop.f32.mrf.mxu3  ;;  %2332 = vmatpush.msra.mxu0 %v3710_v18 }
 0x2ba   :  { %v676_v0 = vsub.f32 1.5, %v675_v21  ;;  %v3717_v21 = vsub.f32 %v2307_v14, %v3710_v18 }
 0x2bc   :  { %v677_v41 = vmul.f32 %v3160_v7, %v676_v0  ;;  %v1663_v54 = vpop.f32.mrf.mxu0  ;;  %v746_v0 = vmul.f32 %v3698_v59, %v745_v4  ;;  %v2364_v1 = vand.u32 4294901760, %v3717_v21  ;;  %v886_v4 = vstv %s3053_s16 }
 0x2be   :  { %v681_v25 = vsel %vm680_vm7, %v3160_v7, %v677_v41  ;;  %v1694_v27 = vpop.f32.mrf.mxu1 }
 0x2bf   :  { %3108 = vpush %v681_v25  ;;  %v1695_v29 = vadd.f32 %v1694_v27, %v1663_v54  ;;  %v784_v54 = vstv %s3702_s30 }
 0x2c0   :  { %v1494_v30 = vpop.f32.mrf.mxu2  ;;  %v1626_v35 = vpop.f32.mrf.mxu3 }
 0x2c1   :  { %v1526_v32 = vadd.f32 %v1525_v24, %v1494_v30 }
 0x2c3   :  { %v1552_v33 = vadd.f32 %v1551_v19, %v1526_v32 }
 0x2c4   :  { %v1772_v42 = vpop.f32.mrf.mxu0 }
 0x2c5   :  { %v1577_v34 = vadd.f32 %v1576_v20, %v1552_v33  ;;  %v2358_v20 = vand.u32 4294901760, %v3708_v17  ;;  %v747_v33 = vadd.f32 %v3698_v59, %v746_v0 }
 0x2c6   :  { %v1795_v52 = vpop.f32.mrf.mxu1 }
 0x2c7   :  { %v2359_v41 = vsub.f32 %v3708_v17, %v2358_v20 }
 0x2c8   :  { %v1603_v36 = vpop.f32.mrf.mxu2  ;;  %v1745_v47 = vpop.f32.mrf.mxu3 }
 0x2c9   :  { %v1604_v37 = vadd.f32 %v1603_v36, %v1577_v34  ;;  %v2360_v27 = vand.u32 4294901760, %v2359_v41  ;;  %v785_v34 = vmul.f32 %v3632_v13, %v784_v54 }
 0x2cb   :  { %v1627_v38 = vadd.f32 %v1626_v35, %v1604_v37  ;;  %2361 = vmatpush.msra.mxu1 %v2360_v27 }
 0x2cd   :  { %v1629_v39 = vadd.f32 %v1627_v38, %v3660_v51  ;;  %v2189_v51 = vand.u32 4294901760, %v2188_v60 }
 0x2cf   :  { %v2190_v2 = vsub.f32 %v2188_v60, %v2189_v51  ;;  %2272 = vmatpush.msrb.mxu2 %v2189_v51 }
 0x2d0   :  { %v1720_v43 = vpop.f32.mrf.mxu2 }
 0x2d1   :  { %v1721_v45 = vadd.f32 %v1720_v43, %v1695_v29  ;;  %v2191_v5 = vand.u32 4294901760, %v2190_v2  ;;  %2276 = vmatpush.msrb.mxu2 %v2195_v3  ;;  %v2365_v29 = vsub.f32 %v3717_v21, %v2364_v1 }
 0x2d3   :  { %v1746_v49 = vadd.f32 %v1745_v47, %v1721_v45  ;;  %2192 = vmatpush.msra.mxu3 %v2191_v5  ;;  %v2366_v35 = vand.u32 4294901760, %v2365_v29  ;;  %v795_v47 = vstv %s3713_s29 }
 0x2d5   :  { %v1773_v50 = vadd.f32 %v1772_v42, %v1746_v49  ;;  %2198 = vmatpush.msra.mxu3 %v2197_v8  ;;  %2367 = vmatpush.msra.mxu1 %v2366_v35 }
 0x2d7   :  { %v1796_v53 = vadd.f32 %v1795_v52, %v1773_v50  ;;  %2297 = vmatpush.msrb.mxu3 %v2160_v57  ;;  %v749_v52 = vsel %vm748_vm8, %v3698_v59, %v747_v33 }
 0x2d9   :  { %v3695_v55 = vadd.f32 %v1796_v53, %v1629_v39  ;;  %2299 = vmatpush.msrb.mxu3 %v2162_v61 }
 0x2db   :  { %v791_v45 = vpop.permute.xlu1 %790 }
 0x2eb   :  { %v722_v11 = vpop.xlane.xlu2 %721 }
 0x2ec   :  { %v723_v15 = vrot.slane %v722_v11, 4 }
 0x2ed   :  { %v734_v7 = vpop.xlane.xlu0 %733 }
 0x2ee   :  { %v724_v19 = vadd.f32 %v723_v15, %v722_v11  ;;  %v735_v31 = vrot.slane %v734_v7, 4  ;;  %v875_v11 = vstv %s3051_s2 }
 0x2ef   :  { %v876_v14 = vmul.f32 %v3632_v13, %v875_v11 }
 0x2f0   :  { %v725_v22 = vrot.slane %v724_v19, 2  ;;  %v736_v23 = vadd.f32 %v735_v31, %v734_v7  ;;  %s3109_s11 = spop %3108  ;;  %v887_v7 = vmul.f32 %v3647_v48, %v886_v4 }
 0x2f1   :  { %s683_s12 = smul.f32 %s3109_s11, %s3035_s1 }
 0x2f2   :  { %v737_v24 = vrot.slane %v736_v23, 2  ;;  %v726_v25 = vadd.f32 %v725_v22, %v724_v19 }
 0x2f3   :  { %s684_s13 = smul.f32 %s683_s12, %s3685_s21  ;;  %v686_v28 = vstv %s683_s12  ;;  %v882_v15 = vpop.permute.xlu2 %881 }
 0x2f4   :  { %v727_v30 = vrot.slane %v726_v25, 1  ;;  %v738_v32 = vadd.f32 %v737_v24, %v736_v23  ;;  %v687_v36 = vmul.f32 %v686_v28, %v3571_v26  ;;  %v690_v37 = vmul.f32 %v686_v28, %v3578_v40  ;;  %v2477_v28 = vld [vmem:[#allocation14 + $0x98] sm:$0xff] }
 0x2f5   :  { %s685_s14 = ssub.f32 %s3036_s28, %s684_s13  ;;  %v793_v26 = vadd.f32 %v791_v45, %v785_v34  ;;  %v796_v40 = vmul.f32 %v3647_v48, %v795_v47  ;;  %v2482_v29 = vsel %vm1466_vm0, %v2477_v28, 0 }
 0x2f6   :  { %v728_v38 = vadd.f32 %v727_v30, %v726_v25  ;;  %v739_v39 = vrot.slane %v738_v32, 1  ;;  %v2476_v30 = vld [vmem:[#allocation14 + $0x90] sm:$0xff]  ;;  %s3049_s13 = sld [smem:[#allocation9 + $0x101]] }
 0x2f7   :  { %v688_v43 = vstv %s685_s14  ;;  %v797_v60 = vadd.f32 %v796_v40, %v793_v26  ;;  %v2500_v33 = vand.u32 4294901760, %v2476_v30  ;;  %s3050_s14 = sld [smem:[#allocation10 + $0x101]] }
 0x2f8   :  { %v689_v49 = vadd.f32 %v688_v43, %v687_v36  ;;  %v691_v42 = vadd.f32 %v690_v37, %v688_v43  ;;  %3110 = vpush %v728_v38  ;;  %v740_v50 = vadd.f32 %v739_v39, %v738_v32  ;;  %v2498_v32 = vand.u32 4294901760, %v2482_v29 }
 0x2f9   :  { %v2532_v35 = vsub.f32 %v2476_v30, %v2500_v33 }
 0x2fa   :  { %v2141_v53 = vsel %vm379_vm2, %v689_v49, 0  ;;  %v2310_v56 = vsel %vm379_vm2, %v691_v42, 0  ;;  %3112 = vpush %v740_v50  ;;  %v2526_v34 = vsub.f32 %v2482_v29, %v2498_v32  ;;  %v2645_v29 = vld [vmem:[#allocation14 + $0xa0] sm:$0xff] }
 0x2fb   :  { %v2333_v10 = vand.u32 4294901760, %v2310_v56  ;;  %3114 = vpush %v749_v52  ;;  %v2164_v57 = vand.u32 4294901760, %v2141_v53  ;;  %v894_v19 = vpop.permute.xlu2 %893  ;;  %v2533_v37 = vand.u32 4294901760, %v2532_v35 }
 0x2fc   :  { %v2527_v36 = vand.u32 4294901760, %v2526_v34 }
 0x2fd   :  { %v2334_v58 = vsub.f32 %v2310_v56, %v2333_v10  ;;  %2200 = vmatmul.f32.vlgmr.msra.gmra.mxu3 %v2164_v57  ;;  %v2165_v16 = vsub.f32 %v2141_v53, %v2164_v57  ;;  %v2534_v39 = vsub.f32 %v2532_v35, %v2533_v37 }
 0x2fe   :  { %2414 = vmatpush.msra.mxu3 %v3704_v46  ;;  %v2528_v38 = vsub.f32 %v2526_v34, %v2527_v36 }
 0x2ff   :  { %2226 = vmatmul.f32.vlgmr.msrb.gmra.mxu0 %v2165_v16  ;;  %v2166_v61 = vand.u32 4294901760, %v2165_v16  ;;  %v2335_v51 = vand.u32 4294901760, %v2334_v58  ;;  %v2535_v45 = vand.u32 4294901760, %v2534_v39 }
 0x300   :  { %2416 = vmatpush.msra.mxu3 %v3710_v18  ;;  %2441 = vmatpush.msrb.mxu0 %v2358_v20  ;;  %v803_v2 = vpop.permute.xlu0 %802  ;;  %v898_v20 = vstv %s3055_s17  ;;  %v2529_v43 = vand.u32 4294901760, %v2528_v38 }
 0x301   :  { %2251 = vmatmul.f32.vlgmr.msrb.gmra.mxu1 %v2166_v61  ;;  %v2167_v3 = vsub.f32 %v2165_v16, %v2166_v61  ;;  %v2336_v59 = vsub.f32 %v2334_v58, %v2335_v51  ;;  %v805_v5 = vadd.f32 %v803_v2, %v797_v60 }
 0x302   :  { %2445 = vmatpush.msrb.mxu0 %v2364_v1  ;;  %2466 = vmatpush.msrb.mxu1 %v3704_v46 }
 0x303   :  { %v2168_v63 = vand.u32 4294901760, %v2167_v3  ;;  %v3738_v6 = vadd.f32 %v807_v62, %v805_v5  ;;  %v2337_v8 = vand.u32 4294901760, %v2336_v59 }
 0x304   :  { %2468 = vmatpush.msrb.mxu1 %v3710_v18 }
 0x305   :  { %2169 = vmatmul.f32.vlgmr.msra.gmra.mxu2 %v2168_v63  ;;  %2301 = vmatmul.f32.vlgmr.msrb.gmra.mxu3 %v2164_v57  ;;  %v811_v12 = vsel %vm379_vm2, %v3738_v6, 0.0  ;;  %v822_v9 = vmul.f32 %v3738_v6, %v3738_v6 }
 0x306   :  { %2389 = vmatpush.msra.mxu2 %v3708_v17  ;;  %812 = vadd.xlane.f32.xlu1 %v811_v12  ;;  %v884_v17 = vadd.f32 %v882_v15, %v876_v14 }
 0x307   :  { %2338 = vmatmul.f32.vlgmr.msra.gmra.mxu0 %v2337_v8  ;;  %v823_v46 = vsel %vm379_vm2, %v822_v9, 0.0  ;;  %2530 = vmatpush.msrb.mxu3 %v2529_v43 }
 0x308   :  { %2392 = vmatpush.msra.mxu2 %v3717_v21  ;;  %824 = vadd.xlane.f32.xlu0 %v823_v46  ;;  %v888_v18 = vadd.f32 %v887_v7, %v884_v17 }
 0x309   :  { %2369 = vmatmul.f32.vlgmr.msra.gmra.mxu1 %v2333_v10  ;;  %2558 = vmatpush.msra.mxu0 %v2526_v34 }
 0x30a   :  { %v896_v31 = vadd.f32 %v894_v19, %v888_v18  ;;  %2583 = vmatpush.msra.mxu1 %v2498_v32  ;;  %2536 = vmatpush.msrb.mxu3 %v2535_v45 }
 0x30b   :  { %2561 = vmatpush.msra.mxu0 %v2532_v35 }
 0x30c   :  { %v3750_v21 = vadd.f32 %v898_v20, %v896_v31  ;;  %2585 = vmatpush.msra.mxu1 %v2500_v33 }
 0x30d   :  { %2278 = vmatmul.f32.vlgmr.msrb.gmra.mxu2 %v2164_v57  ;;  %2420 = vmatmul.f32.vlgmr.msra.gmra.mxu3 %v2335_v51 }
 0x30e   :  { %v902_v22 = vsel %vm379_vm2, %v3750_v21, 0.0  ;;  %v913_v23 = vmul.f32 %v3750_v21, %v3750_v21  ;;  %2499 = vmatpush.msrb.mxu2 %v2498_v32  ;;  %2635 = vmatpush.msra.mxu3 %v2498_v32  ;;  %v2669_v32 = vand.u32 4294901760, %v2645_v29 }
 0x30f   :  { %2447 = vmatmul.f32.vlgmr.msrb.gmra.mxu0 %v2333_v10  ;;  %903 = vadd.xlane.f32.xlu1 %v902_v22 }
 0x310   :  { %v914_v13 = vsel %vm379_vm2, %v913_v23, 0.0  ;;  %2501 = vmatpush.msrb.mxu2 %v2500_v33  ;;  %2637 = vmatpush.msra.mxu3 %v2500_v33  ;;  %v2701_v34 = vsub.f32 %v2645_v29, %v2669_v32 }
 0x311   :  { %2470 = vmatmul.f32.vlgmr.msrb.gmra.mxu1 %v2333_v10  ;;  %915 = vadd.xlane.f32.xlu0 %v914_v13 }
 0x315   :  { %2395 = vmatmul.f32.vlgmr.msra.gmra.mxu2 %v2334_v58 }
 0x316   :  { %2610 = vmatpush.msra.mxu2 %v2527_v36  ;;  %v2702_v36 = vand.u32 4294901760, %v2701_v34 }
 0x318   :  { %2614 = vmatpush.msra.mxu2 %v2533_v37  ;;  %v2703_v38 = vsub.f32 %v2701_v34, %v2702_v36 }
 0x31a   :  { %v2704_v39 = vand.u32 4294901760, %v2703_v38 }
 0x329   :  { %s3111_s18 = spop %3110 }
 0x32b   :  { %s3113_s19 = spop %3112 }
 0x32c   :  { %s3757_s3 = spop %3114 }
 0x32d   :  { %s3760_s0 = smul.f32 %s3757_s3, %s3111_s18 }
 0x32e   :  { %s760_s20 = smul.f32 %s3757_s3, %s3113_s19 }
 0x32f   :  { %s761_s5 = smul.f32 %s3760_s0, %s3760_s0 }
 0x331   :  { %s762_s7 = ssub.f32 %s760_s20, %s761_s5 }
 0x333   :  { %s763_s21 = sadd.f32 1e-05, %s762_s7 }
 0x335   :  { %v764_v48 = vstv %s763_s21 }
 0x336   :  { %3163 = vrsqrt.f32 %v764_v48  ;;  %vm771_vm10 = vweird.f32 %v764_v48 }
 0x33c   :  { %v3164_v0 = vpop.eup %3163 }
 0x33d   :  { %v766_v41 = vmul.f32 %v3164_v0, %v764_v48  ;;  %vm772_vm9 = vweird.f32 %v3164_v0 }
 0x33e   :  { %vm773_vm11 = vmor %vm771_vm10, %vm772_vm9 }
 0x33f   :  { %v767_v1 = vmul.f32 %v3164_v0, %v766_v41 }
 0x341   :  { %v768_v24 = vmul.f32 0.5, %v767_v1 }
 0x343   :  { %v769_v25 = vsub.f32 1.5, %v768_v24 }
 0x345   :  { %v770_v54 = vmul.f32 %v3164_v0, %v769_v25 }
 0x347   :  { %v774_v27 = vsel %vm773_vm11, %v3164_v0, %v770_v54  ;;  %v2646_v54 = vld [vmem:[#allocation14 + $0xa8] sm:$0xff] }
 0x348   :  { %3116 = vpush %v774_v27  ;;  %v2651_v27 = vsel %vm1466_vm0, %v2646_v54, 0 }
 0x349   :  { %v2667_v28 = vand.u32 4294901760, %v2651_v27 }
 0x34b   :  { %v2695_v30 = vsub.f32 %v2651_v27, %v2667_v28  ;;  %2668 = vmatpush.msrb.mxu0 %v2667_v28 }
 0x34d   :  { %v2696_v33 = vand.u32 4294901760, %v2695_v30  ;;  %2670 = vmatpush.msrb.mxu0 %v2669_v32 }
 0x34f   :  { %v2697_v35 = vsub.f32 %v2695_v30, %v2696_v33 }
 0x351   :  { %v2698_v37 = vand.u32 4294901760, %v2697_v35 }
 0x353   :  { %2699 = vmatpush.msrb.mxu1 %v2698_v37 }
 0x355   :  { %2705 = vmatpush.msrb.mxu1 %v2704_v39 }
 0x379   :  { %s3117_s24 = spop %3116  ;;  %v813_v47 = vpop.xlane.xlu1 %812 }
 0x37a   :  { %s776_s25 = smul.f32 %s3117_s24, %s3042_s22  ;;  %v814_v49 = vrot.slane %v813_v47, 4  ;;  %s3057_s22 = sld [smem:[#allocation10 + $0x102]] }
 0x37b   :  { %v825_v50 = vpop.xlane.xlu0 %824 }
 0x37c   :  { %s777_s26 = smul.f32 %s776_s25, %s3760_s0  ;;  %v779_v42 = vstv %s776_s25  ;;  %v815_v52 = vadd.f32 %v814_v49, %v813_v47  ;;  %v826_v53 = vrot.slane %v825_v50, 4 }
 0x37d   :  { %v780_v56 = vmul.f32 %v779_v42, %v3662_v44 }
 0x37e   :  { %s778_s27 = ssub.f32 %s3043_s23, %s777_s26  ;;  %v816_v26 = vrot.slane %v815_v52, 2  ;;  %v827_v40 = vadd.f32 %v826_v53, %v825_v50 }
 0x380   :  { %v781_v10 = vstv %s778_s27  ;;  %v828_v58 = vrot.slane %v827_v40, 2  ;;  %v817_v16 = vadd.f32 %v816_v26, %v815_v52 }
 0x381   :  { %v782_v57 = vadd.f32 %v781_v10, %v780_v56 }
 0x382   :  { %v818_v61 = vrot.slane %v817_v16, 1  ;;  %v829_v51 = vadd.f32 %v828_v58, %v827_v40  ;;  %v904_v12 = vpop.xlane.xlu1 %903 }
 0x383   :  { %v2479_v60 = vsel %vm379_vm2, %v782_v57, 0  ;;  %v905_v46 = vrot.slane %v904_v12, 4 }
 0x384   :  { %v2502_v62 = vand.u32 4294901760, %v2479_v60  ;;  %v819_v2 = vadd.f32 %v818_v61, %v817_v16  ;;  %v830_v3 = vrot.slane %v829_v51, 1  ;;  %v916_v9 = vpop.xlane.xlu0 %915 }
 0x385   :  { %v917_v11 = vrot.slane %v916_v9, 4  ;;  %v906_v15 = vadd.f32 %v905_v46, %v904_v12 }
 0x386   :  { %2538 = vmatmul.f32.vlgmr.msrb.gmra.mxu3 %v2502_v62  ;;  %v2503_v59 = vsub.f32 %v2479_v60, %v2502_v62  ;;  %3118 = vpush %v819_v2  ;;  %v831_v5 = vadd.f32 %v830_v3, %v829_v51  ;;  %v2815_v51 = vld [vmem:[#allocation14 + $0xb8] sm:$0xff]  ;;  %v2814_v2 = vld [vmem:[#allocation14 + $0xb0] sm:$0xff] }
 0x387   :  { %v918_v4 = vadd.f32 %v917_v11, %v916_v9  ;;  %v907_v17 = vrot.slane %v906_v15, 2  ;;  %2752 = vmatpush.msrb.mxu3 %v2667_v28 }
 0x388   :  { %2564 = vmatmul.f32.vlgmr.msra.gmra.mxu0 %v2503_v59  ;;  %v2504_v44 = vand.u32 4294901760, %v2503_v59  ;;  %3120 = vpush %v831_v5 }
 0x389   :  { %v919_v18 = vrot.slane %v918_v4, 2  ;;  %v908_v20 = vadd.f32 %v907_v17, %v906_v15  ;;  %2754 = vmatpush.msrb.mxu3 %v2669_v32  ;;  %2779 = vmatpush.msra.mxu0 %v2696_v33 }
 0x38a   :  { %2589 = vmatmul.f32.vlgmr.msra.gmra.mxu1 %v2504_v44  ;;  %v2505_v63 = vsub.f32 %v2503_v59, %v2504_v44  ;;  %v2838_v59 = vand.u32 4294901760, %v2814_v2 }
 0x38b   :  { %v920_v22 = vadd.f32 %v919_v18, %v918_v4  ;;  %v909_v48 = vrot.slane %v908_v20, 1  ;;  %2783 = vmatpush.msra.mxu0 %v2702_v36  ;;  %2804 = vmatpush.msra.mxu1 %v2667_v28 }
 0x38c   :  { %v2506_v8 = vand.u32 4294901760, %v2505_v63  ;;  %v2870_v44 = vsub.f32 %v2814_v2, %v2838_v59 }
 0x38d   :  { %v921_v0 = vrot.slane %v920_v22, 1  ;;  %v910_v24 = vadd.f32 %v909_v48, %v908_v20  ;;  %2806 = vmatpush.msra.mxu1 %v2669_v32  ;;  %v1889_v48 = vpop.f32.mrf.mxu0 }
 0x38e   :  { %2507 = vmatmul.f32.vlgmr.msrb.gmra.mxu2 %v2506_v8  ;;  %2639 = vmatmul.f32.vlgmr.msra.gmra.mxu3 %v2502_v62  ;;  %v2871_v8 = vand.u32 4294901760, %v2870_v44 }
 0x38f   :  { %v922_v25 = vadd.f32 %v921_v0, %v920_v22  ;;  %2727 = vmatpush.msrb.mxu2 %v2695_v30  ;;  %v1914_v0 = vpop.f32.mrf.mxu1 }
 0x390   :  { %v2872_v9 = vsub.f32 %v2870_v44, %v2871_v8 }
 0x391   :  { %2730 = vmatpush.msrb.mxu2 %v2701_v34 }
 0x392   :  { %v2873_v11 = vand.u32 4294901760, %v2872_v9 }
 0x396   :  { %2616 = vmatmul.f32.vlgmr.msra.gmra.mxu2 %v2502_v62  ;;  %v2820_v62 = vsel %vm1466_vm0, %v2815_v51, 0  ;;  %vm3000_vm0 = vcmask 7168  }
 0x397   :  { %v2836_v3 = vand.u32 4294901760, %v2820_v62 }
 0x399   :  { %v2864_v5 = vsub.f32 %v2820_v62, %v2836_v3  ;;  %2837 = vmatpush.msra.mxu2 %v2836_v3 }
 0x39b   :  { %v2865_v63 = vand.u32 4294901760, %v2864_v5  ;;  %2839 = vmatpush.msra.mxu2 %v2838_v59 }
 0x39d   :  { %v2866_v12 = vsub.f32 %v2864_v5, %v2865_v63 }
 0x39f   :  { %v2867_v46 = vand.u32 4294901760, %v2866_v12 }
 0x3a1   :  { %2868 = vmatpush.msra.mxu3 %v2867_v46 }
 0x3a3   :  { %2874 = vmatpush.msra.mxu3 %v2873_v11 }
 0x3b7   :  { %s3119_s6 = spop %3118 }
 0x3b8   :  { %s3770_s1 = smul.f32 %s3119_s6, %s3757_s3 }
 0x3b9   :  { %s3121_s30 = spop %3120 }
 0x3ba   :  { %s852_s28 = smul.f32 %s3770_s1, %s3770_s1 }
 0x3bb   :  { %s851_s29 = smul.f32 %s3121_s30, %s3757_s3 }
 0x3bd   :  { %s853_s11 = ssub.f32 %s851_s29, %s852_s28 }
 0x3bf   :  { %s854_s12 = sadd.f32 1e-05, %s853_s11 }
 0x3c1   :  { %v855_v14 = vstv %s854_s12 }
 0x3c2   :  { %3165 = vrsqrt.f32 %v855_v14  ;;  %vm862_vm13 = vweird.f32 %v855_v14 }
 0x3c8   :  { %v3166_v7 = vpop.eup %3165 }
 0x3c9   :  { %v857_v19 = vmul.f32 %v3166_v7, %v855_v14  ;;  %vm863_vm12 = vweird.f32 %v3166_v7 }
 0x3ca   :  { %vm864_vm14 = vmor %vm862_vm13, %vm863_vm12 }
 0x3cb   :  { %v858_v31 = vmul.f32 %v3166_v7, %v857_v19 }
 0x3cd   :  { %v859_v23 = vmul.f32 0.5, %v858_v31 }
 0x3cf   :  { %v860_v13 = vsub.f32 1.5, %v859_v23  ;;  %v1863_v23 = vpop.f32.mrf.mxu3 }
 0x3d1   :  { %v861_v41 = vmul.f32 %v3166_v7, %v860_v13  ;;  %v1832_v13 = vpop.f32.mrf.mxu2 }
 0x3d3   :  { %v865_v1 = vsel %vm864_vm14, %v3166_v7, %v861_v41 }
 0x3d4   :  { %3122 = vpush %v865_v1  ;;  %v2001_v1 = vpop.f32.mrf.mxu0 }
 0x3d5   :  { %3124 = vpush %v910_v24  ;;  %v2032_v24 = vpop.f32.mrf.mxu1 }
 0x3d6   :  { %3126 = vpush %v922_v25 }
 0x3d9   :  { %v1941_v41 = vpop.f32.mrf.mxu2 }
 0x3dc   :  { %v2110_v27 = vpop.f32.mrf.mxu0 }
 0x3dd   :  { %v2133_v28 = vpop.f32.mrf.mxu1 }
 0x3e1   :  { %v2058_v54 = vpop.f32.mrf.mxu2 }
 0x3e4   :  { %v2227_v32 = vpop.f32.mrf.mxu0 }
 0x3e5   :  { %v2252_v33 = vpop.f32.mrf.mxu1 }
 0x3e9   :  { %v2170_v30 = vpop.f32.mrf.mxu2 }
 0x3ec   :  { %v2339_v36 = vpop.f32.mrf.mxu0 }
 0x3ed   :  { %v2370_v37 = vpop.f32.mrf.mxu1 }
 0x3f1   :  { %v2279_v35 = vpop.f32.mrf.mxu2 }
 0x3f9   :  { %v2396_v39 = vpop.f32.mrf.mxu2 }
 0x405   :  { %s3123_s15 = spop %3122 }
 0x406   :  { %s867_s2 = smul.f32 %s3123_s15, %s3049_s13  ;;  %s3125_s16 = spop %3124 }
 0x407   :  { %s3777_s17 = smul.f32 %s3125_s16, %s3757_s3  ;;  %s3127_s18 = spop %3126 }
 0x408   :  { %s868_s19 = smul.f32 %s867_s2, %s3770_s1  ;;  %v870_v43 = vstv %s867_s2 }
 0x409   :  { %s943_s0 = smul.f32 %s3777_s17, %s3777_s17  ;;  %v871_v45 = vmul.f32 %v870_v43, %v3738_v6  ;;  %v2448_v43 = vpop.f32.mrf.mxu0 }
 0x40a   :  { %s869_s20 = ssub.f32 %s3050_s14, %s868_s19  ;;  %s942_s5 = smul.f32 %s3127_s18, %s3757_s3 }
 0x40b   :  { %s3056_s3 = sld [smem:[#allocation9 + $0x102]] }
 0x40c   :  { %v872_v47 = vstv %s869_s20  ;;  %s944_s7 = ssub.f32 %s942_s5, %s943_s0 }
 0x40d   :  { %v873_v49 = vadd.f32 %v872_v47, %v871_v45  ;;  %v2471_v45 = vpop.f32.mrf.mxu1 }
 0x40e   :  { %s945_s21 = sadd.f32 1e-05, %s944_s7 }
 0x40f   :  { %v2648_v42 = vsel %vm379_vm2, %v873_v49, 0 }
 0x410   :  { %v946_v50 = vstv %s945_s21  ;;  %v2671_v52 = vand.u32 4294901760, %v2648_v42 }
 0x411   :  { %3167 = vrsqrt.f32 %v946_v50  ;;  %vm953_vm1 = vweird.f32 %v946_v50  ;;  %v2508_v49 = vpop.f32.mrf.mxu2 }
 0x412   :  { %2707 = vmatmul.f32.vlgmr.msrb.gmra.mxu1 %v2671_v52  ;;  %v2672_v53 = vsub.f32 %v2648_v42, %v2671_v52  ;;  %v2565_v42 = vpop.f32.mrf.mxu0 }
 0x413   :  { %2921 = vmatpush.msrb.mxu1 %v2836_v3 }
 0x414   :  { %2733 = vmatmul.f32.vlgmr.msrb.gmra.mxu2 %v2672_v53  ;;  %v2673_v56 = vand.u32 4294901760, %v2672_v53 }
 0x415   :  { %2923 = vmatpush.msrb.mxu1 %v2838_v59  ;;  %2948 = vmatpush.msrb.mxu2 %v2865_v63 }
 0x416   :  { %2758 = vmatmul.f32.vlgmr.msrb.gmra.mxu3 %v2673_v56  ;;  %v2674_v26 = vsub.f32 %v2672_v53, %v2673_v56 }
 0x417   :  { %v3168_v40 = vpop.eup %3167  ;;  %2952 = vmatpush.msrb.mxu2 %v2871_v8  ;;  %2973 = vmatpush.msrb.mxu3 %v2836_v3 }
 0x418   :  { %v948_v10 = vmul.f32 %v3168_v40, %v946_v50  ;;  %v2675_v57 = vand.u32 4294901760, %v2674_v26  ;;  %vm954_vm15 = vweird.f32 %v3168_v40  ;;  %v2590_v50 = vpop.f32.mrf.mxu1 }
 0x419   :  { %vm955_vm3 = vmor %vm953_vm1, %vm954_vm15  ;;  %2975 = vmatpush.msrb.mxu3 %v2838_v59  ;;  %v2617_v56 = vpop.f32.mrf.mxu2 }
 0x41a   :  { %v949_v58 = vmul.f32 %v3168_v40, %v948_v10  ;;  %2676 = vmatmul.f32.vlgmr.msrb.gmra.mxu0 %v2675_v57  ;;  %2808 = vmatmul.f32.vlgmr.msra.gmra.mxu1 %v2671_v52 }
 0x41b   :  { %2896 = vmatpush.msrb.mxu0 %v2864_v5 }
 0x41c   :  { %v950_v6 = vmul.f32 0.5, %v949_v58 }
 0x41d   :  { %2899 = vmatpush.msrb.mxu0 %v2870_v44 }
 0x41e   :  { %v951_v16 = vsub.f32 1.5, %v950_v6 }
 0x420   :  { %v952_v60 = vmul.f32 %v3168_v40, %v951_v16  ;;  %v2371_v16 = vadd.f32 %v2370_v37, %v2339_v36  ;;  %v3143_v37 = vld [vmem:[%s3810_s8] ss:$0 sm:$0xff] }
 0x422   :  { %v956_v61 = vsel %vm955_vm3, %v3168_v40, %v952_v60  ;;  %2785 = vmatmul.f32.vlgmr.msra.gmra.mxu0 %v2671_v52  ;;  %v1864_v52 = vadd.f32 %v1863_v23, %v1832_v13  ;;  %v2033_v40 = vadd.f32 %v2032_v24, %v2001_v1  ;;  %v2397_v62 = vadd.f32 %v2396_v39, %v2371_v16 }
 0x423   :  { %3128 = vpush %v956_v61 }
 0x424   :  { %v1890_v10 = vadd.f32 %v1889_v48, %v1864_v52  ;;  %v2059_v57 = vadd.f32 %v2058_v54, %v2033_v40 }
 0x426   :  { %v1915_v60 = vadd.f32 %v1914_v0, %v1890_v10 }
 0x428   :  { %v1942_v3 = vadd.f32 %v1941_v41, %v1915_v60 }
 0x454   :  { %s3129_s23 = spop %3128 }
 0x455   :  { %s958_s24 = smul.f32 %s3129_s23, %s3056_s3 }
 0x457   :  { %s959_s25 = smul.f32 %s958_s24, %s3777_s17  ;;  %v961_v14 = vstv %s958_s24 }
 0x458   :  { %v962_v15 = vmul.f32 %v961_v14, %v3750_v21  ;;  %v1964_v21 = vpop.f32.mrf.mxu3 }
 0x459   :  { %s960_s26 = ssub.f32 %s3057_s22, %s959_s25  ;;  %v1965_v11 = vadd.f32 %v1964_v21, %v1942_v3 }
 0x45b   :  { %v963_v4 = vstv %s960_s26 }
 0x45c   :  { %v964_v17 = vadd.f32 %v963_v4, %v962_v15 }
 0x45e   :  { %v2817_v7 = vsel %vm379_vm2, %v964_v17, 0  ;;  %vm2993_vm2 = vcmask 392192  }
 0x45f   :  { %v2840_v18 = vand.u32 4294901760, %v2817_v7 }
 0x460   :  { %v2083_v25 = vpop.f32.mrf.mxu3 }
 0x461   :  { %2876 = vmatmul.f32.vlgmr.msra.gmra.mxu3 %v2840_v18  ;;  %v2841_v19 = vsub.f32 %v2817_v7, %v2840_v18  ;;  %v2084_v61 = vadd.f32 %v2083_v25, %v2059_v57 }
 0x463   :  { %2902 = vmatmul.f32.vlgmr.msrb.gmra.mxu0 %v2841_v19  ;;  %v2842_v31 = vand.u32 4294901760, %v2841_v19  ;;  %v2111_v8 = vadd.f32 %v2110_v27, %v2084_v61 }
 0x465   :  { %2927 = vmatmul.f32.vlgmr.msrb.gmra.mxu1 %v2842_v31  ;;  %v2843_v20 = vsub.f32 %v2841_v19, %v2842_v31  ;;  %v2134_v17 = vadd.f32 %v2133_v28, %v2111_v8  ;;  %v1967_v19 = vadd.f32 %v1965_v11, %v3695_v55 }
 0x467   :  { %v2844_v22 = vand.u32 4294901760, %v2843_v20  ;;  %v2136_v41 = vadd.f32 %v2134_v17, %v1967_v19 }
 0x468   :  { %v2201_v29 = vpop.f32.mrf.mxu3 }
 0x469   :  { %2845 = vmatmul.f32.vlgmr.msra.gmra.mxu2 %v2844_v22  ;;  %2977 = vmatmul.f32.vlgmr.msrb.gmra.mxu3 %v2840_v18  ;;  %v2202_v58 = vadd.f32 %v2201_v29, %v2170_v30 }
 0x46b   :  { %v2228_v51 = vadd.f32 %v2227_v32, %v2202_v58 }
 0x46d   :  { %v2253_v12 = vadd.f32 %v2252_v33, %v2228_v51 }
 0x46f   :  { %v2280_v14 = vadd.f32 %v2279_v35, %v2253_v12 }
 0x470   :  { %v2302_v34 = vpop.f32.mrf.mxu3 }
 0x471   :  { %2954 = vmatmul.f32.vlgmr.msrb.gmra.mxu2 %v2840_v18  ;;  %v2303_v22 = vadd.f32 %v2302_v34, %v2280_v14 }
 0x473   :  { %v2305_v21 = vadd.f32 %v2303_v22, %v2136_v41 }
 0x478   :  { %v2421_v38 = vpop.f32.mrf.mxu3 }
 0x479   :  { %v2422_v9 = vadd.f32 %v2421_v38, %v2397_v62 }
 0x47b   :  { %v2449_v7 = vadd.f32 %v2448_v43, %v2422_v9  ;;  %v3144_v43 = vld [vmem:[%s3811_s9] ss:$0 sm:$0xff] }
 0x47d   :  { %v2472_v1 = vadd.f32 %v2471_v45, %v2449_v7 }
 0x47f   :  { %v2474_v29 = vadd.f32 %v2472_v1, %v2305_v21 }
 0x480   :  { %v2539_v47 = vpop.f32.mrf.mxu3 }
 0x481   :  { %v2540_v2 = vadd.f32 %v2539_v47, %v2508_v49 }
 0x483   :  { %v2566_v46 = vadd.f32 %v2565_v42, %v2540_v2  ;;  %v2998_v42 = vstv %s3806_s4 }
 0x485   :  { %v2591_v18 = vadd.f32 %v2590_v50, %v2566_v46 }
 0x487   :  { %v2618_v23 = vadd.f32 %v2617_v56, %v2591_v18 }
 0x488   :  { %v2640_v53 = vpop.f32.mrf.mxu3 }
 0x489   :  { %v2641_v54 = vadd.f32 %v2640_v53, %v2618_v23 }
 0x48b   :  { %v2643_v33 = vadd.f32 %v2641_v54, %v2474_v29 }
 0x48f   :  { %v2708_v6 = vpop.f32.mrf.mxu1 }
 0x497   :  { %v2677_v26 = vpop.f32.mrf.mxu0  ;;  %v2734_v59 = vpop.f32.mrf.mxu2 }
 0x498   :  { %v2709_v44 = vadd.f32 %v2708_v6, %v2677_v26  ;;  %v2809_v4 = vpop.f32.mrf.mxu1 }
 0x499   :  { %v2759_v5 = vpop.f32.mrf.mxu3 }
 0x49a   :  { %v2735_v15 = vadd.f32 %v2734_v59, %v2709_v44 }
 0x49c   :  { %v2760_v13 = vadd.f32 %v2759_v5, %v2735_v15 }
 0x49f   :  { %v2786_v63 = vpop.f32.mrf.mxu0 }
 0x4a0   :  { %v2787_v24 = vadd.f32 %v2786_v63, %v2760_v13 }
 0x4a2   :  { %v2810_v28 = vadd.f32 %v2809_v4, %v2787_v24 }
 0x4a4   :  { %v2812_v36 = vadd.f32 %v2810_v28, %v2643_v33 }
 0x4e0   :  { %v2903_v0 = vpop.f32.mrf.mxu0 }
 0x4e2   :  { %v2928_v27 = vpop.f32.mrf.mxu1 }
 0x4e4   :  { %v2877_v31 = vpop.f32.mrf.mxu3 }
 0x4ec   :  { %v2846_v20 = vpop.f32.mrf.mxu2  ;;  %v2978_v35 = vpop.f32.mrf.mxu3 }
 0x4ed   :  { %v2878_v48 = vadd.f32 %v2877_v31, %v2846_v20 }
 0x4ef   :  { %v2904_v25 = vadd.f32 %v2903_v0, %v2878_v48 }
 0x4f1   :  { %v2929_v30 = vadd.f32 %v2928_v27, %v2904_v25 }
 0x4f4   :  { %v2955_v32 = vpop.f32.mrf.mxu2 }
 0x4f5   :  { %v2956_v55 = vadd.f32 %v2955_v32, %v2929_v30 }
 0x4f7   :  { %v2979_v34 = vadd.f32 %v2978_v35, %v2956_v55 }
 0x4f9   :  { %v2981_v38 = vadd.f32 %v2979_v34, %v2812_v36 }
 0x4fb   :  { %v2986_v39 = vadd.f32 %v3143_v37, %v2981_v38 }
 0x4fd   :  { %v2987_v45 = vmax.f32 %v2986_v39, 0.0 }
 0x4ff   :  { %v2992_v47 = vmul.f32 %v3144_v43, %v2987_v45 }
 0x501   :  { %v2994_v49 = vsel %vm2993_vm2, %v2992_v47, 0.0 }
 0x502   :  { %2995 = vadd.xlane.f32.xlu2 %v2994_v49 }
 0x575   :  { %v2996_v50 = vpop.xlane.xlu2 %2995 }
 0x576   :  { %v2999_v52 = vadd.f32 %v2998_v42, %v2996_v50 }
 0x578   :  { %3001 = vst.msk [vmem:[%s3812_s10] sm:$0xff] %vm3000_vm0, %v2999_v52 }
 0x579   :  { %3006 = vsyncpa [#allocation4], 1 }
 0x57a   :  { %3007 = vsyncpa [#allocation13], 1 }
 0x57b   :  { %3008 = vsyncpa [#allocation5], 1 }
 0x57c   :  { %3009 = vsyncpa [#allocation8], 1 }
 0x57d   :  { %3010 = vsyncpa [#allocation6], 1 }

</bundles_post_ra>
